<compile_context>
chip_gen: v7x
topology: tpu7x:2x2x1
jax: 0.10.0
libtpu: 0.0.40
codegen_flags: <defaults>
</compile_context>

<pallas_src>
import functools

import jax
import jax.numpy as jnp
import numpy as np
from jax import lax
from jax.experimental import pallas as pl
from jax.experimental.pallas import tpu as pltpu

LANE = 128


def _round_up(x, m):
    return ((x + m - 1) // m) * m


def _leaky_relu(x, slope=0.01):
    return jnp.where(x > 0, x, slope * x)


def _fold_bn(gamma, beta, mean, var, eps):
    inv = gamma / jnp.sqrt(var + eps)
    return inv, beta - mean * inv


def _pad_lane_vec(v, cp):
    return jnp.pad(v, (0, cp - v.shape[0])).reshape(1, cp).astype(jnp.float32)


def double_conv_kernel(x_ref, cmask_ref, w1_ref, s1_ref, b1_ref,
                       w2_ref, s2_ref, b2_ref, o_ref, y1_ref,
                       *, TH, Wp, T, H_last):
    """One grid step = one (batch, row-tile) band; everything lane-dense (last dim 128*k).

    x_ref     : (1, (TH+6)*Wp, Cp_in)  f32  flattened padded input band (3-row halo each
                side: 2 data halo rows + 1 zero guard row for the flat dx shifts)
    cmask_ref : (2*Wp, Cp_out)         f32  static column-halo mask (1 sub-band period)
    w*_ref    : (3, 3, Cp, Cp)         bf16 HWIO weights, channel-padded
    s*,b*     : (1, Cp_out)            f32  folded BatchNorm scale / shift
    o_ref     : (1, TH*Wp, Cp_out)     f32  flattened output band (cols sliced in wrapper)
    y1_ref    : ((TH+6)*Wp, Cp_out)    f32  scratch: padded conv1 intermediate
    """
    SUB = 2 * Wp                 # inner sub-band: 2 image rows -> register accumulator
    BASE1 = 2 * Wp               # flat offset of conv1's first computed row (padded row 2)
    BASE2 = 3 * Wp               # flat offset of conv2's first computed row (padded row 3)
    n1 = (TH + 2) // 2           # conv1 sub-bands (computes TH+2 y1 rows)
    n2 = TH // 2                 # conv2 sub-bands (computes TH output rows)
    cp_out = y1_ref.shape[-1]
    t = pl.program_id(0) % T     # row-tile index within the image

    def conv3x3(read, w_ref):
        """Sum of 9 taps, accumulated in registers; bf16 MXU operands, f32 accumulate."""
        acc = None
        for dy in range(3):
            for dx in range(3):
                patch = read((dy - 1) * Wp + (dx - 1)).astype(jnp.bfloat16)
                p = jnp.dot(patch, w_ref[dy, dx],
                            preferred_element_type=jnp.float32)
                acc = p if acc is None else acc + p
        return acc

    # Hygiene rows: the only y1 positions conv2 can read that conv1 does not write are
    # the flat wrap-around elements in padded rows 1 and TH+4 (they feed discarded pad
    # columns only).  Zero those two rows so stale scratch never produces NaN/Inf.
    zrow = jnp.zeros((Wp, cp_out), y1_ref.dtype)
    y1_ref[Wp:2 * Wp, :] = zrow
    y1_ref[(TH + 4) * Wp:(TH + 5) * Wp, :] = zrow

    # ---- conv1 + folded BN + LeakyReLU -> y1 (Dropout2d = identity in eval) ----
    @pl.loop(0, n1)
    def _(i):
        off = pl.multiple_of(i * SUB, 8)
        acc = conv3x3(lambda sh: x_ref[0, pl.ds(BASE1 + off + sh, SUB), :], w1_ref)
        y = _leaky_relu(acc * s1_ref[...] + b1_ref[...])
        y = y * cmask_ref[...]                        # zero the width-halo columns
        y1_ref[pl.ds(BASE1 + off, SUB), :] = y

    # y1 rows that lie outside the real image must be zero so conv2 sees proper
    # 'same' zero padding at the top / bottom image boundary.
    @pl.when(t == 0)
    def _():
        y1_ref[2 * Wp:3 * Wp, :] = zrow               # image row -1

    @pl.when(t == T - 1)
    def _():                                          # image rows >= H
        y1_ref[(3 + H_last) * Wp:(TH + 4) * Wp, :] = jnp.zeros(
            ((TH + 1 - H_last) * Wp, cp_out), y1_ref.dtype)

    # ---- conv2 + folded BN + LeakyReLU ----
    @pl.loop(0, n2)
    def _(j):
        off = pl.multiple_of(j * SUB, 8)
        acc = conv3x3(lambda sh: y1_ref[pl.ds(BASE2 + off + sh, SUB), :], w2_ref)
        y = _leaky_relu(acc * s2_ref[...] + b2_ref[...])
        o_ref[0, pl.ds(off, SUB), :] = y.astype(o_ref.dtype)


def double_conv(x_nchw, w1, gamma1, beta1, mean1, var1,
                w2, gamma2, beta2, mean2, var2, eps=1e-5, tile_rows=64):
    """x_nchw: (N, C_in, H, W) f32 -> (N, C_out, H, W) f32.  Weights in HWIO."""
    N, C_in, H, W = x_nchw.shape
    C_out = w1.shape[-1]

    cp_in = _round_up(max(C_in, LANE), LANE)
    cp_out = _round_up(max(C_out, LANE), LANE)
    Wp = _round_up(W + 2, 8)                  # padded width: multiple of 8 sublanes

    TH = min(_round_up(tile_rows, 2), _round_up(H, 2))   # even row-tile height
    T = -(-H // TH)                                      # tiles per image
    Hpad = T * TH
    H_last = H - (T - 1) * TH                            # valid rows in the last tile
    R = TH + 6                                           # padded rows per tile band
    SUB = 2 * Wp

    # Fold BatchNorm (eval mode) into per-channel scale/shift, pad to lane width.
    s1, b1 = _fold_bn(gamma1, beta1, mean1, var1, eps)
    s2, b2 = _fold_bn(gamma2, beta2, mean2, var2, eps)
    s1p, b1p = _pad_lane_vec(s1, cp_out), _pad_lane_vec(b1, cp_out)
    s2p, b2p = _pad_lane_vec(s2, cp_out), _pad_lane_vec(b2, cp_out)

    # Weights: channel-pad to 128 lanes, cast MXU operands to bf16.
    w1p = jnp.pad(w1, ((0, 0), (0, 0), (0, cp_in - C_in),
                       (0, cp_out - C_out))).astype(jnp.bfloat16)
    w2p = jnp.pad(w2, ((0, 0), (0, 0), (0, cp_out - C_out),
                       (0, cp_out - C_out))).astype(jnp.bfloat16)

    # Static column-halo mask for one sub-band (period Wp), precomputed once. (glue)
    col_ok = ((np.arange(Wp) >= 1) & (np.arange(Wp) <= W)).astype(np.float32)
    cmask = jnp.asarray(np.ascontiguousarray(
        np.broadcast_to(np.tile(col_ok, 2)[:, None], (SUB, cp_out))))

    # NCHW -> NHWC -> zero-pad (3 guard/halo rows top, Hpad-H+3 bottom, 1 col left,
    # Wp-W-1 cols right, channels to 128) -> replicate per-tile row bands with their
    # 2-row data halo -> flatten each band to one lane-dense slab. (glue)
    x_nhwc = jnp.transpose(x_nchw, (0, 2, 3, 1))
    x_pad = jnp.pad(x_nhwc, ((0, 0), (3, Hpad - H + 3), (1, Wp - W - 1),
                             (0, cp_in - C_in)))
    x_tiles = jnp.stack([x_pad[:, t * TH:t * TH + R] for t in range(T)], axis=1)
    x_tiles = x_tiles.reshape(N * T, R * Wp, cp_in).astype(jnp.float32)

    kernel = functools.partial(double_conv_kernel, TH=TH, Wp=Wp, T=T, H_last=H_last)

    # VMEM budget from actual block/scratch sizes (double-buffered pipeline inputs and
    # outputs + persistent scratch), 1.3x headroom, capped at 3/4 of physical VMEM.
    per_step = (R * Wp * cp_in * 4 * 2                      # input band (2 buffers)
                + TH * Wp * cp_out * 4 * 2                  # output band (2 buffers)
                + (9 * cp_in * cp_out + 9 * cp_out * cp_out) * 2 * 2   # bf16 weights
                + (SUB + 4) * cp_out * 4 * 2                # mask + scale/shift vectors
                + R * Wp * cp_out * 4)                      # y1 scratch
    try:
        phys = int(pltpu.get_tpu_info().vmem_capacity_bytes)
    except Exception:
        phys = 64 * 1024 * 1024
    vmem_limit = int(min(max(per_step * 13 // 10, 32 * 1024 * 1024), phys * 3 // 4))

    out_flat = pl.pallas_call(
        kernel,
        out_shape=jax.ShapeDtypeStruct((N * T, TH * Wp, cp_out), jnp.float32),
        grid_spec=pltpu.PrefetchScalarGridSpec(
            num_scalar_prefetch=0,
            grid=(N * T,),
            in_specs=[
                pl.BlockSpec((1, R * Wp, cp_in), lambda g: (g, 0, 0)),
                pl.BlockSpec((SUB, cp_out), lambda g: (0, 0)),
                pl.BlockSpec((3, 3, cp_in, cp_out), lambda g: (0, 0, 0, 0)),
                pl.BlockSpec((1, cp_out), lambda g: (0, 0)),
                pl.BlockSpec((1, cp_out), lambda g: (0, 0)),
                pl.BlockSpec((3, 3, cp_out, cp_out), lambda g: (0, 0, 0, 0)),
                pl.BlockSpec((1, cp_out), lambda g: (0, 0)),
                pl.BlockSpec((1, cp_out), lambda g: (0, 0)),
            ],
            out_specs=pl.BlockSpec((1, TH * Wp, cp_out), lambda g: (g, 0, 0)),
            scratch_shapes=[
                pltpu.VMEM((R * Wp, cp_out), jnp.float32),   # padded conv1 intermediate
            ],
        ),
        compiler_params=pltpu.CompilerParams(
            dimension_semantics=("parallel",),
            vmem_limit_bytes=vmem_limit,
        ),
    )(x_tiles, cmask, w1p, s1p, b1p, w2p, s2p, b2p)

    # Drop the row / width / channel padding, back to NCHW. (glue)
    out = out_flat.reshape(N, Hpad, Wp, cp_out)[:, :H, 1:W + 1, :C_out]
    return jnp.transpose(out, (0, 3, 1, 2))


def _reference(x_nchw, s1, b1, s2, b2, w1, w2):
    """Pure-JAX eval-mode reference using the same bf16-operand / f32-accumulate
    numerics as the kernel (folded BN).  NCHW in / NCHW out."""
    dn = ("NHWC", "HWIO", "NHWC")
    f32 = jnp.float32
    x = jnp.transpose(x_nchw, (0, 2, 3, 1)).astype(jnp.bfloat16).astype(f32)
    w1b = w1.astype(jnp.bfloat16).astype(f32)
    w2b = w2.astype(jnp.bfloat16).astype(f32)

    y = lax.conv_general_dilated(x, w1b, (1, 1), "SAME", dimension_numbers=dn,
                                 precision=lax.Precision.HIGHEST)
    y = _leaky_relu(y * s1 + b1)
    y = y.astype(jnp.bfloat16).astype(f32)
    y = lax.conv_general_dilated(y, w2b, (1, 1), "SAME", dimension_numbers=dn,
                                 precision=lax.Precision.HIGHEST)
    y = _leaky_relu(y * s2 + b2)
    return jnp.transpose(y, (0, 3, 1, 2))


if __name__ == "__main__":
    N, C_in, C_out, H, W = 2, 4, 8, 16, 16

    key = jax.random.PRNGKey(0)
    ks = jax.random.split(key, 11)

    x = jax.random.normal(ks[0], (N, C_in, H, W), jnp.float32)

    # Conv weights in HWIO layout (3, 3, in, out); real PyTorch OIHW weights would
    # need a transpose(2, 3, 1, 0) first.
    w1 = jax.random.normal(ks[1], (3, 3, C_in, C_out), jnp.float32) * 0.2
    w2 = jax.random.normal(ks[2], (3, 3, C_out, C_out), jnp.float32) * 0.2

    # BatchNorm parameters / running statistics (deterministic, non-trivial).
    gamma1 = 1.0 + 0.1 * jax.random.normal(ks[3], (C_out,), jnp.float32)
    beta1 = 0.1 * jax.random.normal(ks[4], (C_out,), jnp.float32)
    mean1 = 0.1 * jax.random.normal(ks[5], (C_out,), jnp.float32)
    var1 = jnp.abs(1.0 + 0.1 * jax.random.normal(ks[6], (C_out,), jnp.float32))

    gamma2 = 1.0 + 0.1 * jax.random.normal(ks[7], (C_out,), jnp.float32)
    beta2 = 0.1 * jax.random.normal(ks[8], (C_out,), jnp.float32)
    mean2 = 0.1 * jax.random.normal(ks[9], (C_out,), jnp.float32)
    var2 = jnp.abs(1.0 + 0.1 * jax.random.normal(ks[10], (C_out,), jnp.float32))

    s1, b1 = _fold_bn(gamma1, beta1, mean1, var1, 1e-5)
    s2, b2 = _fold_bn(gamma2, beta2, mean2, var2, 1e-5)
    ref = _reference(x, s1, b1, s2, b2, w1, w2)

    # Even split: H=16 into two 8-row tiles (exercises the halo exchange path).
    out = double_conv(x, w1, gamma1, beta1, mean1, var1,
                      w2, gamma2, beta2, mean2, var2, tile_rows=8)
    out = jax.block_until_ready(out)
    assert out.shape == (N, C_out, H, W)
    max_err = float(jnp.max(jnp.abs(out - ref)))
    assert jnp.allclose(out, ref, atol=2e-3, rtol=2e-3), max_err

    # Ragged split: H=16 into 6-row tiles (T=3, last tile has 4 valid rows).
    out2 = jax.block_until_ready(
        double_conv(x, w1, gamma1, beta1, mean1, var1,
                    w2, gamma2, beta2, mean2, var2, tile_rows=6))
    max_err2 = float(jnp.max(jnp.abs(out2 - ref)))
    assert jnp.allclose(out2, ref, atol=2e-3, rtol=2e-3), max_err2

    print("KERNEL_OK")
</pallas_src>

<mosaic_0001>
module attributes {stable_mosaic.version = 11 : i64} {
  func.func @double_conv_kernel(%arg0: i32, %arg1: memref<1x336x128xf32, #tpu.memory_space<vmem>>, %arg2: memref<48x128xf32, #tpu.memory_space<vmem>>, %arg3: memref<3x3x128x128xbf16, #tpu.memory_space<vmem>>, %arg4: memref<1x128xf32, #tpu.memory_space<vmem>>, %arg5: memref<1x128xf32, #tpu.memory_space<vmem>>, %arg6: memref<3x3x128x128xbf16, #tpu.memory_space<vmem>>, %arg7: memref<1x128xf32, #tpu.memory_space<vmem>>, %arg8: memref<1x128xf32, #tpu.memory_space<vmem>>, %arg9: memref<1x192x128xf32, #tpu.memory_space<vmem>>, %arg10: memref<336x128xf32, #tpu.memory_space<vmem>>) attributes {dimension_semantics = [#tpu.dimension_semantics<parallel>], iteration_bounds = array<i64: 4>, scalar_prefetch = 0 : i64, scratch_operands = 1 : i64, tpu.core_type = #tpu.core_type<tc>, window_params = [{transform_indices = @transform_0, window_bounds = array<i64: 1, 336, 128>}, {pipeline_mode = #tpu.pipeline_mode<synchronous>, transform_indices = @transform_1, window_bounds = array<i64: 48, 128>}, {pipeline_mode = #tpu.pipeline_mode<synchronous>, transform_indices = @transform_2, window_bounds = array<i64: 3, 3, 128, 128>}, {pipeline_mode = #tpu.pipeline_mode<synchronous>, transform_indices = @transform_3, window_bounds = array<i64: 1, 128>}, {pipeline_mode = #tpu.pipeline_mode<synchronous>, transform_indices = @transform_4, window_bounds = array<i64: 1, 128>}, {pipeline_mode = #tpu.pipeline_mode<synchronous>, transform_indices = @transform_5, window_bounds = array<i64: 3, 3, 128, 128>}, {pipeline_mode = #tpu.pipeline_mode<synchronous>, transform_indices = @transform_6, window_bounds = array<i64: 1, 128>}, {pipeline_mode = #tpu.pipeline_mode<synchronous>, transform_indices = @transform_7, window_bounds = array<i64: 1, 128>}, {transform_indices = @transform_8, window_bounds = array<i64: 1, 192, 128>}]} {
    %c2_i32 = arith.constant 2 : i32
    %c0_i32 = arith.constant 0 : i32
    %0 = arith.cmpi eq, %c2_i32, %c0_i32 : i32
    %c1_i32 = arith.constant 1 : i32
    %1 = arith.select %0, %c1_i32, %c2_i32 : i32
    %2 = arith.remsi %arg0, %1 : i32
    %c0_i32_0 = arith.constant 0 : i32
    %3 = arith.cmpi ne, %2, %c0_i32_0 : i32
    %c0_i32_1 = arith.constant 0 : i32
    %4 = arith.cmpi slt, %2, %c0_i32_1 : i32
    %c0_i32_2 = arith.constant 0 : i32
    %5 = arith.cmpi slt, %1, %c0_i32_2 : i32
    %6 = arith.xori %4, %5 : i1
    %7 = arith.andi %6, %3 : i1
    %8 = arith.addi %2, %1 : i32
    %9 = arith.select %7, %8, %2 : i32
    %cst = arith.constant 0.000000e+00 : f32
    %10 = vector.broadcast %cst : f32 to vector<24x128xf32>
    %c24 = arith.constant 24 : index
    %c0 = arith.constant 0 : index
    %11 = vector.load %arg10[%c24, %c0] : memref<336x128xf32, #tpu.memory_space<vmem>>, vector<24x128xf32>
    tpu.vector_store %arg10[%c24, %c0], %10 {strides = array<i32>} : memref<336x128xf32, #tpu.memory_space<vmem>>, vector<24x128xf32>,
    %c288 = arith.constant 288 : index
    %c0_3 = arith.constant 0 : index
    %12 = vector.load %arg10[%c288, %c0_3] : memref<336x128xf32, #tpu.memory_space<vmem>>, vector<24x128xf32>
    tpu.vector_store %arg10[%c288, %c0_3], %10 {strides = array<i32>} : memref<336x128xf32, #tpu.memory_space<vmem>>, vector<24x128xf32>,
    %c0_i32_4 = arith.constant 0 : i32
    %c5_i32 = arith.constant 5 : i32
    %13 = arith.addi %c0_i32_4, %c5_i32 : i32
    %c1_i32_5 = arith.constant 1 : i32
    scf.for %arg11 = %c0_i32_4 to %13 step %c1_i32_5  : i32 {
      %c1_i32_14 = arith.constant 1 : i32
      %21 = arith.muli %arg11, %c1_i32_14 : i32
      %c0_i32_15 = arith.constant 0 : i32
      %22 = arith.addi %c0_i32_15, %21 : i32
      %c48_i32 = arith.constant 48 : i32
      %23 = arith.muli %22, %c48_i32 : i32
      %24 = tpu.assume_multiple %23, 8 : i32
      %c48_i32_16 = arith.constant 48 : i32
      %25 = arith.addi %c48_i32_16, %24 : i32
      %c-25_i32 = arith.constant -25 : i32
      %26 = arith.addi %25, %c-25_i32 : i32
      %c0_17 = arith.constant 0 : index
      %27 = arith.index_cast %26 : i32 to index
      %c0_18 = arith.constant 0 : index
      %28 = vector.load %arg1[%c0_17, %27, %c0_18] : memref<1x336x128xf32, #tpu.memory_space<vmem>>, vector<1x48x128xf32>
      %29 = vector.shape_cast %28 : vector<1x48x128xf32> to vector<48x128xf32>
      %30 = arith.truncf %29 : vector<48x128xf32> to vector<48x128xbf16>
      %c0_19 = arith.constant 0 : index
      %c0_20 = arith.constant 0 : index
      %c0_21 = arith.constant 0 : index
      %c0_22 = arith.constant 0 : index
      %31 = vector.load %arg3[%c0_19, %c0_20, %c0_21, %c0_22] : memref<3x3x128x128xbf16, #tpu.memory_space<vmem>>, vector<1x1x128x128xbf16>
      %32 = vector.shape_cast %31 : vector<1x1x128x128xbf16> to vector<128x128xbf16>
      %cst_23 = arith.constant dense<0.000000e+00> : vector<48x128xf32>
      %33 = tpu.matmul %30, %32, %cst_23 {dimension_numbers = #tpu.dot_dimension_numbers<[1], [0], [0], [1], [0, 0, 1, 1], [], []>} : vector<48x128xbf16>, vector<128x128xbf16>, vector<48x128xf32> -> vector<48x128xf32>
      %c48_i32_24 = arith.constant 48 : i32
      %34 = arith.addi %c48_i32_24, %24 : i32
      %c-24_i32 = arith.constant -24 : i32
      %35 = arith.addi %34, %c-24_i32 : i32
      %c0_25 = arith.constant 0 : index
      %36 = arith.index_cast %35 : i32 to index
      %c0_26 = arith.constant 0 : index
      %37 = vector.load %arg1[%c0_25, %36, %c0_26] : memref<1x336x128xf32, #tpu.memory_space<vmem>>, vector<1x48x128xf32>
      %38 = vector.shape_cast %37 : vector<1x48x128xf32> to vector<48x128xf32>
      %39 = arith.truncf %38 : vector<48x128xf32> to vector<48x128xbf16>
      %c0_27 = arith.constant 0 : index
      %c1 = arith.constant 1 : index
      %c0_28 = arith.constant 0 : index
      %c0_29 = arith.constant 0 : index
      %40 = vector.load %arg3[%c0_27, %c1, %c0_28, %c0_29] : memref<3x3x128x128xbf16, #tpu.memory_space<vmem>>, vector<1x1x128x128xbf16>
      %41 = vector.shape_cast %40 : vector<1x1x128x128xbf16> to vector<128x128xbf16>
      %cst_30 = arith.constant dense<0.000000e+00> : vector<48x128xf32>
      %42 = tpu.matmul %39, %41, %cst_30 {dimension_numbers = #tpu.dot_dimension_numbers<[1], [0], [0], [1], [0, 0, 1, 1], [], []>} : vector<48x128xbf16>, vector<128x128xbf16>, vector<48x128xf32> -> vector<48x128xf32>
      %43 = arith.addf %33, %42 : vector<48x128xf32>
      %c48_i32_31 = arith.constant 48 : i32
      %44 = arith.addi %c48_i32_31, %24 : i32
      %c-23_i32 = arith.constant -23 : i32
      %45 = arith.addi %44, %c-23_i32 : i32
      %c0_32 = arith.constant 0 : index
      %46 = arith.index_cast %45 : i32 to index
      %c0_33 = arith.constant 0 : index
      %47 = vector.load %arg1[%c0_32, %46, %c0_33] : memref<1x336x128xf32, #tpu.memory_space<vmem>>, vector<1x48x128xf32>
      %48 = vector.shape_cast %47 : vector<1x48x128xf32> to vector<48x128xf32>
      %49 = arith.truncf %48 : vector<48x128xf32> to vector<48x128xbf16>
      %c0_34 = arith.constant 0 : index
      %c2 = arith.constant 2 : index
      %c0_35 = arith.constant 0 : index
      %c0_36 = arith.constant 0 : index
      %50 = vector.load %arg3[%c0_34, %c2, %c0_35, %c0_36] : memref<3x3x128x128xbf16, #tpu.memory_space<vmem>>, vector<1x1x128x128xbf16>
      %51 = vector.shape_cast %50 : vector<1x1x128x128xbf16> to vector<128x128xbf16>
      %cst_37 = arith.constant dense<0.000000e+00> : vector<48x128xf32>
      %52 = tpu.matmul %49, %51, %cst_37 {dimension_numbers = #tpu.dot_dimension_numbers<[1], [0], [0], [1], [0, 0, 1, 1], [], []>} : vector<48x128xbf16>, vector<128x128xbf16>, vector<48x128xf32> -> vector<48x128xf32>
      %53 = arith.addf %43, %52 : vector<48x128xf32>
      %c48_i32_38 = arith.constant 48 : i32
      %54 = arith.addi %c48_i32_38, %24 : i32
      %c-1_i32 = arith.constant -1 : i32
      %55 = arith.addi %54, %c-1_i32 : i32
      %c0_39 = arith.constant 0 : index
      %56 = arith.index_cast %55 : i32 to index
      %c0_40 = arith.constant 0 : index
      %57 = vector.load %arg1[%c0_39, %56, %c0_40] : memref<1x336x128xf32, #tpu.memory_space<vmem>>, vector<1x48x128xf32>
      %58 = vector.shape_cast %57 : vector<1x48x128xf32> to vector<48x128xf32>
      %59 = arith.truncf %58 : vector<48x128xf32> to vector<48x128xbf16>
      %c1_41 = arith.constant 1 : index
      %c0_42 = arith.constant 0 : index
      %c0_43 = arith.constant 0 : index
      %c0_44 = arith.constant 0 : index
      %60 = vector.load %arg3[%c1_41, %c0_42, %c0_43, %c0_44] : memref<3x3x128x128xbf16, #tpu.memory_space<vmem>>, vector<1x1x128x128xbf16>
      %61 = vector.shape_cast %60 : vector<1x1x128x128xbf16> to vector<128x128xbf16>
      %cst_45 = arith.constant dense<0.000000e+00> : vector<48x128xf32>
      %62 = tpu.matmul %59, %61, %cst_45 {dimension_numbers = #tpu.dot_dimension_numbers<[1], [0], [0], [1], [0, 0, 1, 1], [], []>} : vector<48x128xbf16>, vector<128x128xbf16>, vector<48x128xf32> -> vector<48x128xf32>
      %63 = arith.addf %53, %62 : vector<48x128xf32>
      %c48_i32_46 = arith.constant 48 : i32
      %64 = arith.addi %c48_i32_46, %24 : i32
      %c0_i32_47 = arith.constant 0 : i32
      %65 = arith.addi %64, %c0_i32_47 : i32
      %c0_48 = arith.constant 0 : index
      %66 = arith.index_cast %65 : i32 to index
      %c0_49 = arith.constant 0 : index
      %67 = vector.load %arg1[%c0_48, %66, %c0_49] : memref<1x336x128xf32, #tpu.memory_space<vmem>>, vector<1x48x128xf32>
      %68 = vector.shape_cast %67 : vector<1x48x128xf32> to vector<48x128xf32>
      %69 = arith.truncf %68 : vector<48x128xf32> to vector<48x128xbf16>
      %c1_50 = arith.constant 1 : index
      %c1_51 = arith.constant 1 : index
      %c0_52 = arith.constant 0 : index
      %c0_53 = arith.constant 0 : index
      %70 = vector.load %arg3[%c1_50, %c1_51, %c0_52, %c0_53] : memref<3x3x128x128xbf16, #tpu.memory_space<vmem>>, vector<1x1x128x128xbf16>
      %71 = vector.shape_cast %70 : vector<1x1x128x128xbf16> to vector<128x128xbf16>
      %cst_54 = arith.constant dense<0.000000e+00> : vector<48x128xf32>
      %72 = tpu.matmul %69, %71, %cst_54 {dimension_numbers = #tpu.dot_dimension_numbers<[1], [0], [0], [1], [0, 0, 1, 1], [], []>} : vector<48x128xbf16>, vector<128x128xbf16>, vector<48x128xf32> -> vector<48x128xf32>
      %73 = arith.addf %63, %72 : vector<48x128xf32>
      %c48_i32_55 = arith.constant 48 : i32
      %74 = arith.addi %c48_i32_55, %24 : i32
      %c1_i32_56 = arith.constant 1 : i32
      %75 = arith.addi %74, %c1_i32_56 : i32
      %c0_57 = arith.constant 0 : index
      %76 = arith.index_cast %75 : i32 to index
      %c0_58 = arith.constant 0 : index
      %77 = vector.load %arg1[%c0_57, %76, %c0_58] : memref<1x336x128xf32, #tpu.memory_space<vmem>>, vector<1x48x128xf32>
      %78 = vector.shape_cast %77 : vector<1x48x128xf32> to vector<48x128xf32>
      %79 = arith.truncf %78 : vector<48x128xf32> to vector<48x128xbf16>
      %c1_59 = arith.constant 1 : index
      %c2_60 = arith.constant 2 : index
      %c0_61 = arith.constant 0 : index
      %c0_62 = arith.constant 0 : index
      %80 = vector.load %arg3[%c1_59, %c2_60, %c0_61, %c0_62] : memref<3x3x128x128xbf16, #tpu.memory_space<vmem>>, vector<1x1x128x128xbf16>
      %81 = vector.shape_cast %80 : vector<1x1x128x128xbf16> to vector<128x128xbf16>
      %cst_63 = arith.constant dense<0.000000e+00> : vector<48x128xf32>
      %82 = tpu.matmul %79, %81, %cst_63 {dimension_numbers = #tpu.dot_dimension_numbers<[1], [0], [0], [1], [0, 0, 1, 1], [], []>} : vector<48x128xbf16>, vector<128x128xbf16>, vector<48x128xf32> -> vector<48x128xf32>
      %83 = arith.addf %73, %82 : vector<48x128xf32>
      %c48_i32_64 = arith.constant 48 : i32
      %84 = arith.addi %c48_i32_64, %24 : i32
      %c23_i32 = arith.constant 23 : i32
      %85 = arith.addi %84, %c23_i32 : i32
      %c0_65 = arith.constant 0 : index
      %86 = arith.index_cast %85 : i32 to index
      %c0_66 = arith.constant 0 : index
      %87 = vector.load %arg1[%c0_65, %86, %c0_66] : memref<1x336x128xf32, #tpu.memory_space<vmem>>, vector<1x48x128xf32>
      %88 = vector.shape_cast %87 : vector<1x48x128xf32> to vector<48x128xf32>
      %89 = arith.truncf %88 : vector<48x128xf32> to vector<48x128xbf16>
      %c2_67 = arith.constant 2 : index
      %c0_68 = arith.constant 0 : index
      %c0_69 = arith.constant 0 : index
      %c0_70 = arith.constant 0 : index
      %90 = vector.load %arg3[%c2_67, %c0_68, %c0_69, %c0_70] : memref<3x3x128x128xbf16, #tpu.memory_space<vmem>>, vector<1x1x128x128xbf16>
      %91 = vector.shape_cast %90 : vector<1x1x128x128xbf16> to vector<128x128xbf16>
      %cst_71 = arith.constant dense<0.000000e+00> : vector<48x128xf32>
      %92 = tpu.matmul %89, %91, %cst_71 {dimension_numbers = #tpu.dot_dimension_numbers<[1], [0], [0], [1], [0, 0, 1, 1], [], []>} : vector<48x128xbf16>, vector<128x128xbf16>, vector<48x128xf32> -> vector<48x128xf32>
      %93 = arith.addf %83, %92 : vector<48x128xf32>
      %c48_i32_72 = arith.constant 48 : i32
      %94 = arith.addi %c48_i32_72, %24 : i32
      %c24_i32 = arith.constant 24 : i32
      %95 = arith.addi %94, %c24_i32 : i32
      %c0_73 = arith.constant 0 : index
      %96 = arith.index_cast %95 : i32 to index
      %c0_74 = arith.constant 0 : index
      %97 = vector.load %arg1[%c0_73, %96, %c0_74] : memref<1x336x128xf32, #tpu.memory_space<vmem>>, vector<1x48x128xf32>
      %98 = vector.shape_cast %97 : vector<1x48x128xf32> to vector<48x128xf32>
      %99 = arith.truncf %98 : vector<48x128xf32> to vector<48x128xbf16>
      %c2_75 = arith.constant 2 : index
      %c1_76 = arith.constant 1 : index
      %c0_77 = arith.constant 0 : index
      %c0_78 = arith.constant 0 : index
      %100 = vector.load %arg3[%c2_75, %c1_76, %c0_77, %c0_78] : memref<3x3x128x128xbf16, #tpu.memory_space<vmem>>, vector<1x1x128x128xbf16>
      %101 = vector.shape_cast %100 : vector<1x1x128x128xbf16> to vector<128x128xbf16>
      %cst_79 = arith.constant dense<0.000000e+00> : vector<48x128xf32>
      %102 = tpu.matmul %99, %101, %cst_79 {dimension_numbers = #tpu.dot_dimension_numbers<[1], [0], [0], [1], [0, 0, 1, 1], [], []>} : vector<48x128xbf16>, vector<128x128xbf16>, vector<48x128xf32> -> vector<48x128xf32>
      %103 = arith.addf %93, %102 : vector<48x128xf32>
      %c48_i32_80 = arith.constant 48 : i32
      %104 = arith.addi %c48_i32_80, %24 : i32
      %c25_i32 = arith.constant 25 : i32
      %105 = arith.addi %104, %c25_i32 : i32
      %c0_81 = arith.constant 0 : index
      %106 = arith.index_cast %105 : i32 to index
      %c0_82 = arith.constant 0 : index
      %107 = vector.load %arg1[%c0_81, %106, %c0_82] : memref<1x336x128xf32, #tpu.memory_space<vmem>>, vector<1x48x128xf32>
      %108 = vector.shape_cast %107 : vector<1x48x128xf32> to vector<48x128xf32>
      %109 = arith.truncf %108 : vector<48x128xf32> to vector<48x128xbf16>
      %c2_83 = arith.constant 2 : index
      %c2_84 = arith.constant 2 : index
      %c0_85 = arith.constant 0 : index
      %c0_86 = arith.constant 0 : index
      %110 = vector.load %arg3[%c2_83, %c2_84, %c0_85, %c0_86] : memref<3x3x128x128xbf16, #tpu.memory_space<vmem>>, vector<1x1x128x128xbf16>
      %111 = vector.shape_cast %110 : vector<1x1x128x128xbf16> to vector<128x128xbf16>
      %cst_87 = arith.constant dense<0.000000e+00> : vector<48x128xf32>
      %112 = tpu.matmul %109, %111, %cst_87 {dimension_numbers = #tpu.dot_dimension_numbers<[1], [0], [0], [1], [0, 0, 1, 1], [], []>} : vector<48x128xbf16>, vector<128x128xbf16>, vector<48x128xf32> -> vector<48x128xf32>
      %113 = arith.addf %103, %112 : vector<48x128xf32>
      %c0_88 = arith.constant 0 : index
      %c0_89 = arith.constant 0 : index
      %114 = vector.load %arg4[%c0_88, %c0_89] : memref<1x128xf32, #tpu.memory_space<vmem>>, vector<1x128xf32>
      %115 = vector.broadcast %114 : vector<1x128xf32> to vector<48x128xf32>
      %116 = arith.mulf %113, %115 : vector<48x128xf32>
      %c0_90 = arith.constant 0 : index
      %c0_91 = arith.constant 0 : index
      %117 = vector.load %arg5[%c0_90, %c0_91] : memref<1x128xf32, #tpu.memory_space<vmem>>, vector<1x128xf32>
      %118 = vector.broadcast %117 : vector<1x128xf32> to vector<48x128xf32>
      %119 = arith.addf %116, %118 : vector<48x128xf32>
      %cst_92 = arith.constant 0.000000e+00 : f32
      %120 = vector.broadcast %cst_92 : f32 to vector<48x128xf32>
      %121 = arith.cmpf ogt, %119, %120 : vector<48x128xf32>
      %cst_93 = arith.constant 0.00999999977 : f32
      %122 = vector.broadcast %cst_93 : f32 to vector<48x128xf32>
      %123 = arith.mulf %122, %119 : vector<48x128xf32>
      %124 = arith.select %121, %119, %123 : vector<48x128xi1>, vector<48x128xf32>
      %c0_94 = arith.constant 0 : index
      %c0_95 = arith.constant 0 : index
      %125 = vector.load %arg2[%c0_94, %c0_95] : memref<48x128xf32, #tpu.memory_space<vmem>>, vector<48x128xf32>
      %126 = arith.mulf %124, %125 : vector<48x128xf32>
      %c48_i32_96 = arith.constant 48 : i32
      %127 = arith.addi %c48_i32_96, %24 : i32
      %128 = arith.index_cast %127 : i32 to index
      %c0_97 = arith.constant 0 : index
      %129 = vector.load %arg10[%128, %c0_97] : memref<336x128xf32, #tpu.memory_space<vmem>>, vector<48x128xf32>
      tpu.vector_store %arg10[%128, %c0_97], %126 {strides = array<i32>} : memref<336x128xf32, #tpu.memory_space<vmem>>, vector<48x128xf32>,
    }
    %c5_i32_6 = arith.constant 5 : i32
    %c0_i32_7 = arith.constant 0 : i32
    %14 = arith.cmpi eq, %9, %c0_i32_7 : i32
    %15 = arith.extui %14 : i1 to i32
    %c0_i32_8 = arith.constant 0 : i32
    %16 = arith.cmpi ne, %15, %c0_i32_8 : i32
    scf.if %16 {
      %c48 = arith.constant 48 : index
      %c0_14 = arith.constant 0 : index
      %21 = vector.load %arg10[%c48, %c0_14] : memref<336x128xf32, #tpu.memory_space<vmem>>, vector<24x128xf32>
      tpu.vector_store %arg10[%c48, %c0_14], %10 {strides = array<i32>} : memref<336x128xf32, #tpu.memory_space<vmem>>, vector<24x128xf32>,
    } else {
    }
    %c1_i32_9 = arith.constant 1 : i32
    %17 = arith.cmpi eq, %9, %c1_i32_9 : i32
    %18 = arith.extui %17 : i1 to i32
    %c0_i32_10 = arith.constant 0 : i32
    %19 = arith.cmpi ne, %18, %c0_i32_10 : i32
    scf.if %19 {
      %cst_14 = arith.constant 0.000000e+00 : f32
      %21 = vector.broadcast %cst_14 : f32 to vector<24x128xf32>
      %c264 = arith.constant 264 : index
      %c0_15 = arith.constant 0 : index
      %22 = vector.load %arg10[%c264, %c0_15] : memref<336x128xf32, #tpu.memory_space<vmem>>, vector<24x128xf32>
      tpu.vector_store %arg10[%c264, %c0_15], %21 {strides = array<i32>} : memref<336x128xf32, #tpu.memory_space<vmem>>, vector<24x128xf32>,
    } else {
    }
    %c0_i32_11 = arith.constant 0 : i32
    %c4_i32 = arith.constant 4 : i32
    %20 = arith.addi %c0_i32_11, %c4_i32 : i32
    %c1_i32_12 = arith.constant 1 : i32
    scf.for %arg11 = %c0_i32_11 to %20 step %c1_i32_12  : i32 {
      %c1_i32_14 = arith.constant 1 : i32
      %21 = arith.muli %arg11, %c1_i32_14 : i32
      %c0_i32_15 = arith.constant 0 : i32
      %22 = arith.addi %c0_i32_15, %21 : i32
      %c48_i32 = arith.constant 48 : i32
      %23 = arith.muli %22, %c48_i32 : i32
      %24 = tpu.assume_multiple %23, 8 : i32
      %c72_i32 = arith.constant 72 : i32
      %25 = arith.addi %c72_i32, %24 : i32
      %c-25_i32 = arith.constant -25 : i32
      %26 = arith.addi %25, %c-25_i32 : i32
      %27 = arith.index_cast %26 : i32 to index
      %c0_16 = arith.constant 0 : index
      %28 = vector.load %arg10[%27, %c0_16] : memref<336x128xf32, #tpu.memory_space<vmem>>, vector<48x128xf32>
      %29 = arith.truncf %28 : vector<48x128xf32> to vector<48x128xbf16>
      %c0_17 = arith.constant 0 : index
      %c0_18 = arith.constant 0 : index
      %c0_19 = arith.constant 0 : index
      %c0_20 = arith.constant 0 : index
      %30 = vector.load %arg6[%c0_17, %c0_18, %c0_19, %c0_20] : memref<3x3x128x128xbf16, #tpu.memory_space<vmem>>, vector<1x1x128x128xbf16>
      %31 = vector.shape_cast %30 : vector<1x1x128x128xbf16> to vector<128x128xbf16>
      %cst_21 = arith.constant dense<0.000000e+00> : vector<48x128xf32>
      %32 = tpu.matmul %29, %31, %cst_21 {dimension_numbers = #tpu.dot_dimension_numbers<[1], [0], [0], [1], [0, 0, 1, 1], [], []>} : vector<48x128xbf16>, vector<128x128xbf16>, vector<48x128xf32> -> vector<48x128xf32>
      %c72_i32_22 = arith.constant 72 : i32
      %33 = arith.addi %c72_i32_22, %24 : i32
      %c-24_i32 = arith.constant -24 : i32
      %34 = arith.addi %33, %c-24_i32 : i32
      %35 = arith.index_cast %34 : i32 to index
      %c0_23 = arith.constant 0 : index
      %36 = vector.load %arg10[%35, %c0_23] : memref<336x128xf32, #tpu.memory_space<vmem>>, vector<48x128xf32>
      %37 = arith.truncf %36 : vector<48x128xf32> to vector<48x128xbf16>
      %c0_24 = arith.constant 0 : index
      %c1 = arith.constant 1 : index
      %c0_25 = arith.constant 0 : index
      %c0_26 = arith.constant 0 : index
      %38 = vector.load %arg6[%c0_24, %c1, %c0_25, %c0_26] : memref<3x3x128x128xbf16, #tpu.memory_space<vmem>>, vector<1x1x128x128xbf16>
      %39 = vector.shape_cast %38 : vector<1x1x128x128xbf16> to vector<128x128xbf16>
      %cst_27 = arith.constant dense<0.000000e+00> : vector<48x128xf32>
      %40 = tpu.matmul %37, %39, %cst_27 {dimension_numbers = #tpu.dot_dimension_numbers<[1], [0], [0], [1], [0, 0, 1, 1], [], []>} : vector<48x128xbf16>, vector<128x128xbf16>, vector<48x128xf32> -> vector<48x128xf32>
      %41 = arith.addf %32, %40 : vector<48x128xf32>
      %c72_i32_28 = arith.constant 72 : i32
      %42 = arith.addi %c72_i32_28, %24 : i32
      %c-23_i32 = arith.constant -23 : i32
      %43 = arith.addi %42, %c-23_i32 : i32
      %44 = arith.index_cast %43 : i32 to index
      %c0_29 = arith.constant 0 : index
      %45 = vector.load %arg10[%44, %c0_29] : memref<336x128xf32, #tpu.memory_space<vmem>>, vector<48x128xf32>
      %46 = arith.truncf %45 : vector<48x128xf32> to vector<48x128xbf16>
      %c0_30 = arith.constant 0 : index
      %c2 = arith.constant 2 : index
      %c0_31 = arith.constant 0 : index
      %c0_32 = arith.constant 0 : index
      %47 = vector.load %arg6[%c0_30, %c2, %c0_31, %c0_32] : memref<3x3x128x128xbf16, #tpu.memory_space<vmem>>, vector<1x1x128x128xbf16>
      %48 = vector.shape_cast %47 : vector<1x1x128x128xbf16> to vector<128x128xbf16>
      %cst_33 = arith.constant dense<0.000000e+00> : vector<48x128xf32>
      %49 = tpu.matmul %46, %48, %cst_33 {dimension_numbers = #tpu.dot_dimension_numbers<[1], [0], [0], [1], [0, 0, 1, 1], [], []>} : vector<48x128xbf16>, vector<128x128xbf16>, vector<48x128xf32> -> vector<48x128xf32>
      %50 = arith.addf %41, %49 : vector<48x128xf32>
      %c72_i32_34 = arith.constant 72 : i32
      %51 = arith.addi %c72_i32_34, %24 : i32
      %c-1_i32 = arith.constant -1 : i32
      %52 = arith.addi %51, %c-1_i32 : i32
      %53 = arith.index_cast %52 : i32 to index
      %c0_35 = arith.constant 0 : index
      %54 = vector.load %arg10[%53, %c0_35] : memref<336x128xf32, #tpu.memory_space<vmem>>, vector<48x128xf32>
      %55 = arith.truncf %54 : vector<48x128xf32> to vector<48x128xbf16>
      %c1_36 = arith.constant 1 : index
      %c0_37 = arith.constant 0 : index
      %c0_38 = arith.constant 0 : index
      %c0_39 = arith.constant 0 : index
      %56 = vector.load %arg6[%c1_36, %c0_37, %c0_38, %c0_39] : memref<3x3x128x128xbf16, #tpu.memory_space<vmem>>, vector<1x1x128x128xbf16>
      %57 = vector.shape_cast %56 : vector<1x1x128x128xbf16> to vector<128x128xbf16>
      %cst_40 = arith.constant dense<0.000000e+00> : vector<48x128xf32>
      %58 = tpu.matmul %55, %57, %cst_40 {dimension_numbers = #tpu.dot_dimension_numbers<[1], [0], [0], [1], [0, 0, 1, 1], [], []>} : vector<48x128xbf16>, vector<128x128xbf16>, vector<48x128xf32> -> vector<48x128xf32>
      %59 = arith.addf %50, %58 : vector<48x128xf32>
      %c72_i32_41 = arith.constant 72 : i32
      %60 = arith.addi %c72_i32_41, %24 : i32
      %c0_i32_42 = arith.constant 0 : i32
      %61 = arith.addi %60, %c0_i32_42 : i32
      %62 = arith.index_cast %61 : i32 to index
      %c0_43 = arith.constant 0 : index
      %63 = vector.load %arg10[%62, %c0_43] : memref<336x128xf32, #tpu.memory_space<vmem>>, vector<48x128xf32>
      %64 = arith.truncf %63 : vector<48x128xf32> to vector<48x128xbf16>
      %c1_44 = arith.constant 1 : index
      %c1_45 = arith.constant 1 : index
      %c0_46 = arith.constant 0 : index
      %c0_47 = arith.constant 0 : index
      %65 = vector.load %arg6[%c1_44, %c1_45, %c0_46, %c0_47] : memref<3x3x128x128xbf16, #tpu.memory_space<vmem>>, vector<1x1x128x128xbf16>
      %66 = vector.shape_cast %65 : vector<1x1x128x128xbf16> to vector<128x128xbf16>
      %cst_48 = arith.constant dense<0.000000e+00> : vector<48x128xf32>
      %67 = tpu.matmul %64, %66, %cst_48 {dimension_numbers = #tpu.dot_dimension_numbers<[1], [0], [0], [1], [0, 0, 1, 1], [], []>} : vector<48x128xbf16>, vector<128x128xbf16>, vector<48x128xf32> -> vector<48x128xf32>
      %68 = arith.addf %59, %67 : vector<48x128xf32>
      %c72_i32_49 = arith.constant 72 : i32
      %69 = arith.addi %c72_i32_49, %24 : i32
      %c1_i32_50 = arith.constant 1 : i32
      %70 = arith.addi %69, %c1_i32_50 : i32
      %71 = arith.index_cast %70 : i32 to index
      %c0_51 = arith.constant 0 : index
      %72 = vector.load %arg10[%71, %c0_51] : memref<336x128xf32, #tpu.memory_space<vmem>>, vector<48x128xf32>
      %73 = arith.truncf %72 : vector<48x128xf32> to vector<48x128xbf16>
      %c1_52 = arith.constant 1 : index
      %c2_53 = arith.constant 2 : index
      %c0_54 = arith.constant 0 : index
      %c0_55 = arith.constant 0 : index
      %74 = vector.load %arg6[%c1_52, %c2_53, %c0_54, %c0_55] : memref<3x3x128x128xbf16, #tpu.memory_space<vmem>>, vector<1x1x128x128xbf16>
      %75 = vector.shape_cast %74 : vector<1x1x128x128xbf16> to vector<128x128xbf16>
      %cst_56 = arith.constant dense<0.000000e+00> : vector<48x128xf32>
      %76 = tpu.matmul %73, %75, %cst_56 {dimension_numbers = #tpu.dot_dimension_numbers<[1], [0], [0], [1], [0, 0, 1, 1], [], []>} : vector<48x128xbf16>, vector<128x128xbf16>, vector<48x128xf32> -> vector<48x128xf32>
      %77 = arith.addf %68, %76 : vector<48x128xf32>
      %c72_i32_57 = arith.constant 72 : i32
      %78 = arith.addi %c72_i32_57, %24 : i32
      %c23_i32 = arith.constant 23 : i32
      %79 = arith.addi %78, %c23_i32 : i32
      %80 = arith.index_cast %79 : i32 to index
      %c0_58 = arith.constant 0 : index
      %81 = vector.load %arg10[%80, %c0_58] : memref<336x128xf32, #tpu.memory_space<vmem>>, vector<48x128xf32>
      %82 = arith.truncf %81 : vector<48x128xf32> to vector<48x128xbf16>
      %c2_59 = arith.constant 2 : index
      %c0_60 = arith.constant 0 : index
      %c0_61 = arith.constant 0 : index
      %c0_62 = arith.constant 0 : index
      %83 = vector.load %arg6[%c2_59, %c0_60, %c0_61, %c0_62] : memref<3x3x128x128xbf16, #tpu.memory_space<vmem>>, vector<1x1x128x128xbf16>
      %84 = vector.shape_cast %83 : vector<1x1x128x128xbf16> to vector<128x128xbf16>
      %cst_63 = arith.constant dense<0.000000e+00> : vector<48x128xf32>
      %85 = tpu.matmul %82, %84, %cst_63 {dimension_numbers = #tpu.dot_dimension_numbers<[1], [0], [0], [1], [0, 0, 1, 1], [], []>} : vector<48x128xbf16>, vector<128x128xbf16>, vector<48x128xf32> -> vector<48x128xf32>
      %86 = arith.addf %77, %85 : vector<48x128xf32>
      %c72_i32_64 = arith.constant 72 : i32
      %87 = arith.addi %c72_i32_64, %24 : i32
      %c24_i32 = arith.constant 24 : i32
      %88 = arith.addi %87, %c24_i32 : i32
      %89 = arith.index_cast %88 : i32 to index
      %c0_65 = arith.constant 0 : index
      %90 = vector.load %arg10[%89, %c0_65] : memref<336x128xf32, #tpu.memory_space<vmem>>, vector<48x128xf32>
      %91 = arith.truncf %90 : vector<48x128xf32> to vector<48x128xbf16>
      %c2_66 = arith.constant 2 : index
      %c1_67 = arith.constant 1 : index
      %c0_68 = arith.constant 0 : index
      %c0_69 = arith.constant 0 : index
      %92 = vector.load %arg6[%c2_66, %c1_67, %c0_68, %c0_69] : memref<3x3x128x128xbf16, #tpu.memory_space<vmem>>, vector<1x1x128x128xbf16>
      %93 = vector.shape_cast %92 : vector<1x1x128x128xbf16> to vector<128x128xbf16>
      %cst_70 = arith.constant dense<0.000000e+00> : vector<48x128xf32>
      %94 = tpu.matmul %91, %93, %cst_70 {dimension_numbers = #tpu.dot_dimension_numbers<[1], [0], [0], [1], [0, 0, 1, 1], [], []>} : vector<48x128xbf16>, vector<128x128xbf16>, vector<48x128xf32> -> vector<48x128xf32>
      %95 = arith.addf %86, %94 : vector<48x128xf32>
      %c72_i32_71 = arith.constant 72 : i32
      %96 = arith.addi %c72_i32_71, %24 : i32
      %c25_i32 = arith.constant 25 : i32
      %97 = arith.addi %96, %c25_i32 : i32
      %98 = arith.index_cast %97 : i32 to index
      %c0_72 = arith.constant 0 : index
      %99 = vector.load %arg10[%98, %c0_72] : memref<336x128xf32, #tpu.memory_space<vmem>>, vector<48x128xf32>
      %100 = arith.truncf %99 : vector<48x128xf32> to vector<48x128xbf16>
      %c2_73 = arith.constant 2 : index
      %c2_74 = arith.constant 2 : index
      %c0_75 = arith.constant 0 : index
      %c0_76 = arith.constant 0 : index
      %101 = vector.load %arg6[%c2_73, %c2_74, %c0_75, %c0_76] : memref<3x3x128x128xbf16, #tpu.memory_space<vmem>>, vector<1x1x128x128xbf16>
      %102 = vector.shape_cast %101 : vector<1x1x128x128xbf16> to vector<128x128xbf16>
      %cst_77 = arith.constant dense<0.000000e+00> : vector<48x128xf32>
      %103 = tpu.matmul %100, %102, %cst_77 {dimension_numbers = #tpu.dot_dimension_numbers<[1], [0], [0], [1], [0, 0, 1, 1], [], []>} : vector<48x128xbf16>, vector<128x128xbf16>, vector<48x128xf32> -> vector<48x128xf32>
      %104 = arith.addf %95, %103 : vector<48x128xf32>
      %c0_78 = arith.constant 0 : index
      %c0_79 = arith.constant 0 : index
      %105 = vector.load %arg7[%c0_78, %c0_79] : memref<1x128xf32, #tpu.memory_space<vmem>>, vector<1x128xf32>
      %106 = vector.broadcast %105 : vector<1x128xf32> to vector<48x128xf32>
      %107 = arith.mulf %104, %106 : vector<48x128xf32>
      %c0_80 = arith.constant 0 : index
      %c0_81 = arith.constant 0 : index
      %108 = vector.load %arg8[%c0_80, %c0_81] : memref<1x128xf32, #tpu.memory_space<vmem>>, vector<1x128xf32>
      %109 = vector.broadcast %108 : vector<1x128xf32> to vector<48x128xf32>
      %110 = arith.addf %107, %109 : vector<48x128xf32>
      %cst_82 = arith.constant 0.000000e+00 : f32
      %111 = vector.broadcast %cst_82 : f32 to vector<48x128xf32>
      %112 = arith.cmpf ogt, %110, %111 : vector<48x128xf32>
      %cst_83 = arith.constant 0.00999999977 : f32
      %113 = vector.broadcast %cst_83 : f32 to vector<48x128xf32>
      %114 = arith.mulf %113, %110 : vector<48x128xf32>
      %115 = arith.select %112, %110, %114 : vector<48x128xi1>, vector<48x128xf32>
      %c0_84 = arith.constant 0 : index
      %116 = arith.index_cast %24 : i32 to index
      %c0_85 = arith.constant 0 : index
      %117 = vector.load %arg9[%c0_84, %116, %c0_85] : memref<1x192x128xf32, #tpu.memory_space<vmem>>, vector<1x48x128xf32>
      %118 = vector.shape_cast %117 : vector<1x48x128xf32> to vector<48x128xf32>
      %119 = vector.shape_cast %115 : vector<48x128xf32> to vector<1x48x128xf32>
      tpu.vector_store %arg9[%c0_84, %116, %c0_85], %119 {strides = array<i32>} : memref<1x192x128xf32, #tpu.memory_space<vmem>>, vector<1x48x128xf32>,
    }
    %c4_i32_13 = arith.constant 4 : i32
    return
  }
  func.func @transform_0(%arg0: i32) -> (i32, i32, i32) {
    %c0_i32 = arith.constant 0 : i32
    %c0_i32_0 = arith.constant 0 : i32
    %c0_i32_1 = arith.constant 0 : i32
    return %arg0, %c0_i32, %c0_i32_0 : i32, i32, i32
  }
  func.func @transform_1(%arg0: i32) -> (i32, i32) {
    %c0_i32 = arith.constant 0 : i32
    %c0_i32_0 = arith.constant 0 : i32
    %c0_i32_1 = arith.constant 0 : i32
    return %c0_i32, %c0_i32_0 : i32, i32
  }
  func.func @transform_2(%arg0: i32) -> (i32, i32, i32, i32) {
    %c0_i32 = arith.constant 0 : i32
    %c0_i32_0 = arith.constant 0 : i32
    %c0_i32_1 = arith.constant 0 : i32
    %c0_i32_2 = arith.constant 0 : i32
    %c0_i32_3 = arith.constant 0 : i32
    return %c0_i32, %c0_i32_0, %c0_i32_1, %c0_i32_2 : i32, i32, i32, i32
  }
  func.func @transform_3(%arg0: i32) -> (i32, i32) {
    %c0_i32 = arith.constant 0 : i32
    %c0_i32_0 = arith.constant 0 : i32
    %c0_i32_1 = arith.constant 0 : i32
    return %c0_i32, %c0_i32_0 : i32, i32
  }
  func.func @transform_4(%arg0: i32) -> (i32, i32) {
    %c0_i32 = arith.constant 0 : i32
    %c0_i32_0 = arith.constant 0 : i32
    %c0_i32_1 = arith.constant 0 : i32
    return %c0_i32, %c0_i32_0 : i32, i32
  }
  func.func @transform_5(%arg0: i32) -> (i32, i32, i32, i32) {
    %c0_i32 = arith.constant 0 : i32
    %c0_i32_0 = arith.constant 0 : i32
    %c0_i32_1 = arith.constant 0 : i32
    %c0_i32_2 = arith.constant 0 : i32
    %c0_i32_3 = arith.constant 0 : i32
    return %c0_i32, %c0_i32_0, %c0_i32_1, %c0_i32_2 : i32, i32, i32, i32
  }
  func.func @transform_6(%arg0: i32) -> (i32, i32) {
    %c0_i32 = arith.constant 0 : i32
    %c0_i32_0 = arith.constant 0 : i32
    %c0_i32_1 = arith.constant 0 : i32
    return %c0_i32, %c0_i32_0 : i32, i32
  }
  func.func @transform_7(%arg0: i32) -> (i32, i32) {
    %c0_i32 = arith.constant 0 : i32
    %c0_i32_0 = arith.constant 0 : i32
    %c0_i32_1 = arith.constant 0 : i32
    return %c0_i32, %c0_i32_0 : i32, i32
  }
  func.func @transform_8(%arg0: i32) -> (i32, i32, i32) {
    %c0_i32 = arith.constant 0 : i32
    %c0_i32_0 = arith.constant 0 : i32
    %c0_i32_1 = arith.constant 0 : i32
    return %arg0, %c0_i32, %c0_i32_0 : i32, i32, i32
  }
}

</mosaic_0001>

<bundles_post_ra>
// kernel: tpu_custom_call.1
= control target key start
LH: loop header
LB: loop body
LE: loop exit
PB: predicated region body
PF: predicated region fallthrough
CT: control target
= control target key end

     0   :  { %s5691_s0 = inlined_call_operand.hbm [shape: f32[4,336,128], index: 0, kind: input, shape index: {}]   ;;  %s5692_s1 = inlined_call_operand.hbm [shape: f32[48,128], index: 1, kind: input, shape index: {}]   ;;  %s5693_s2 = inlined_call_operand.hbm [shape: bf16[3,3,128,128], index: 2, kind: input, shape index: {}]   ;;  %s5694_s3 = inlined_call_operand.vmem [shape: f32[1,128], index: 3, kind: input, shape index: {}]   ;;  %s5695_s4 = inlined_call_operand.vmem [shape: f32[1,128], index: 4, kind: input, shape index: {}]   ;;  %s5696_s5 = inlined_call_operand.hbm [shape: bf16[3,3,128,128], index: 5, kind: input, shape index: {}]   ;;  %s5697_s6 = inlined_call_operand.vmem [shape: f32[1,128], index: 6, kind: input, shape index: {}]   ;;  %s5698_s7 = inlined_call_operand.vmem [shape: f32[1,128], index: 7, kind: input, shape index: {}]   ;;  %s5699_s8 = inlined_call_operand.hbm [shape: f32[4,192,128], index: 8, kind: output, shape index: {}]  }
   0x1   :  { %5707 = sst [smem:[#allocation18_spill]] %s5692_s1 }
   0x2   :  { %13 = vsyncpa [#allocation4], 0 }
   0x3   :  { %15 = vsyncpa [#allocation4 + $0x1], 0 }
   0x4   :  { %16 = vsyncpa [#allocation7], 0 }
   0x5   :  { %17 = vsyncpa [#allocation10], 0 }
   0x6   :  { %18 = vsyncpa [#allocation5], 0 }
   0x7   :  { %20 = vsyncpa [#allocation5 + $0x1], 0  ;;  %s4901_s27 = smov 0   ;;  %s4903_s28 = smov 0  }
   0x8   :  { %s4905_s29 = smov 0   ;;  %s4907_s30 = smov 0  }
   0x9 LB: > { %5708 = sst [smem:[#allocation16_spill]] %s4816_s27  ;;  %s4922_s9 = sadd.s32 4294967295, %s4828_s30   ;;  %s4828_s30 = sphi %s4907_s30, %s5733_s30   ;;  %s4824_s29 = sphi %s4905_s29, %s5732_s29   ;;  %s4820_s28 = sphi %s4903_s28, %s5731_s28   ;;  %s4816_s27 = sphi %s4901_s27, %s5730_s27  }
   0xa   : > { %s3190_s10 = sadd.s32 4294967294, %s4828_s30   ;;  %p46_p0 = scmp.ne.s32.totalorder %s4820_s28, %s4816_s27 }
   0xb   : > { %p5700_p1 = scmp.eq.s32.totalorder %s4922_s9, 0  ;;  %p223_p3 = scmp.eq.s32.totalorder %s3190_s10, 3 }
   0xc   : > { %p3191_p5 = scmp.ge.s32.totalorder %s4828_s30, 1  ;;  %p230_p7 = scmp.lt.s32.totalorder %s4828_s30, 5 }
   0xd   : > { %p4931_p4 = por %p5700_p1, %p46_p0  ;;  %p4936_p6 = por %p223_p3, %p46_p0 }
   0xe   : > { %p4941_p8 = pnand %p3191_p5, %p230_p7  ;;  %s4838_s14 = smov [#allocation6]  }
   0xf   : > { %s5709_s11 = scalar_select %p4931_p4, 1, 0 }
  0x10   : > { %s5710_s12 = scalar_select %p4936_p6, 1, 0 }
  0x11   : > { %s5712_s13 = scalar_select %p4941_p8, 1, 0 }
  0x12   : > { %5711 = sst [smem:[#allocation17_spill]] %s5710_s12  ;;  %s242_s15 = sshll.u32 %s4838_s14, 4  ;;  %s243_s15 = int_to_ptr.vmem [resolvable:$true] %s242_s15 }
  0x13   : > { %p4398_p9 = pneg %p4941_p8  ;;  %s4839_s17 = smov [#allocation8]  }
  0x14   : > { %s255_s18 = sshll.u32 %s4839_s17, 4  ;;  %s5714_s1 = sld [smem:[#allocation18_spill]]  ;;  %s4953_s18 = int_to_ptr.vmem [resolvable:$true] %s255_s18 }
  0x15   : > { %p4949_p10 = pnand %p4398_p9, %p5700_p1 }
  0x17   : > { %p4963_p12 = pneg %p4949_p10 }
  0x1a   : > { %s4632_s21 = scalar_lea.hbm %s5714_s1, 768 }
  0x1b   : > { %p4633_p11 = scmp.ne.s32.totalorder %s5714_s1, %s4632_s21  ;;  %p4639_p3 = scmp.lt.u32.totalorder %s4632_s21, %s5714_s1 }
  0x1d   : > { %p4635_p13 = pnand %p4963_p12, %p4633_p11 }
  0x1f   : > { %p4636_p0 = pneg %p4635_p13 }
  0x21   : > { %p4641_p5 = pnand %p4639_p3, %p4636_p0 }
  0x23   : > { %4644 = shalt.err (!%p4641_p5)
}
  0x24   : > { %s4645_s10 = scalar_lea.vmem %s243_s15, 768  ;;  %p4653_p2 = scmp.lt.s32.totalorder %s243_s15, %s243_s15 }
  0x25   : > { %p4646_p7 = scmp.ne.s32.totalorder %s243_s15, %s4645_s10  ;;  %p4654_p6 = scmp.lt.s32.totalorder %s4645_s10, %s4645_s10 }
  0x27   : > { %p4648_p9 = pnand %p4646_p7, %p4963_p12  ;;  %p4655_p4 = por %p4654_p6, %p4653_p2 }
  0x29   : > { %p4649_p1 = pneg %p4648_p9 }
  0x2b   : > { %p4656_p8 = pnand %p4655_p4, %p4649_p1 }
  0x2d   : > { %4659 = shalt.err (!%p4656_p8)
}
  0x2e   : > { %s5704_s14 = smov 128   ;;  %s5705_s17 = smov 8  }
  0x2f   : > { %4401 = dma.hbm_to_vmem [thread:$0]  (!%p4949_p10), %s5714_s1, 768, %s243_s15, [#allocation7], %s5704_s14, %s5704_s14, %s5705_s17  }
  0x30   : > { %s4660_s23 = scalar_lea.hbm %s5693_s2, 9216 }
  0x31   : > { %p4661_p1 = scmp.ne.s32.totalorder %s5693_s2, %s4660_s23  ;;  %p4667_p6 = scmp.lt.u32.totalorder %s4660_s23, %s5693_s2 }
  0x33   : > { %p4663_p2 = pnand %p4661_p1, %p4963_p12 }
  0x35   : > { %p4664_p4 = pneg %p4663_p2 }
  0x37   : > { %p4669_p8 = pnand %p4667_p6, %p4664_p4 }
  0x39   : > { %4672 = shalt.err (!%p4669_p8)
}
  0x3a   : > { %s4673_s15 = scalar_lea.vmem %s4953_s18, 9216  ;;  %p4681_p3 = scmp.lt.s32.totalorder %s4953_s18, %s4953_s18 }
  0x3b   : > { %p4674_p11 = scmp.ne.s32.totalorder %s4953_s18, %s4673_s15  ;;  %p4682_p5 = scmp.lt.s32.totalorder %s4673_s15, %s4673_s15 }
  0x3d   : > { %p4676_p13 = pnand %p4674_p11, %p4963_p12  ;;  %p4683_p7 = por %p4682_p5, %p4681_p3 }
  0x3f   : > { %p4677_p0 = pneg %p4676_p13 }
  0x41   : > { %p4684_p9 = pnand %p4683_p7, %p4677_p0 }
  0x43   : > { %4687 = shalt.err (!%p4684_p9)
}
  0x44   : > { %s4842_s19 = smov 64   ;;  %s4843_s12 = smov 4  }
  0x45   : > { %4404 = dma.hbm_to_vmem [thread:$0]  (!%p4949_p10), %s5693_s2, 9216, %s4953_s18, [#allocation7], %s4842_s19, %s4842_s19, %s4843_s12  }
  0x46   : > { %s4844_s22 = smov [#allocation9]   ;;  %s5006_s25 = sadd.s32 1, %s4828_s30  }
  0x47   : > { %s274_s23 = sshll.u32 %s4844_s22, 4  ;;  %s4688_s15 = scalar_lea.hbm %s5696_s5, 9216  ;;  %s275_s23 = int_to_ptr.vmem [resolvable:$true] %s274_s23 }
  0x48   : > { %p4689_p1 = scmp.ne.s32.totalorder %s5696_s5, %s4688_s15  ;;  %p4695_p6 = scmp.lt.u32.totalorder %s4688_s15, %s5696_s5 }
  0x4a   : > { %p4691_p2 = pnand %p4689_p1, %p4963_p12 }
  0x4c   : > { %p4692_p4 = pneg %p4691_p2 }
  0x4e   : > { %p4697_p8 = pnand %p4695_p6, %p4692_p4 }
  0x50   : > { %4700 = shalt.err (!%p4697_p8)
}
  0x51   : > { %s4701_s18 = scalar_lea.vmem %s275_s23, 9216  ;;  %p4709_p3 = scmp.lt.s32.totalorder %s275_s23, %s275_s23 }
  0x52   : > { %p4702_p11 = scmp.ne.s32.totalorder %s275_s23, %s4701_s18  ;;  %p4710_p5 = scmp.lt.s32.totalorder %s4701_s18, %s4701_s18 }
  0x54   : > { %p4704_p13 = pnand %p4702_p11, %p4963_p12  ;;  %p4711_p7 = por %p4710_p5, %p4709_p3 }
  0x56   : > { %p4705_p0 = pneg %p4704_p13 }
  0x58   : > { %p4712_p9 = pnand %p4711_p7, %p4705_p0 }
  0x5a   : > { %4715 = shalt.err (!%p4712_p9)
}
  0x5b   : > { %4407 = dma.hbm_to_vmem [thread:$0]  (!%p4949_p10), %s5696_s5, 9216, %s275_s23, [#allocation10], %s4842_s19, %s4842_s19, %s4843_s12  }
  0x5c   : > { %s30_s1 = ssub.s32 %s4828_s30, %s5006_s25  ;;  %s33_s27 = sadd.s32 1, %s4824_s29 }
  0x5d   : > { %p31_p12 = scmp.eq.s32.totalorder %s30_s1, 0  ;;  %p40_p1 = scmp.ne.s32.totalorder %s4824_s29, %s4820_s28 }
  0x5e   : > { %p41_p2 = scmp.eq.s32.totalorder %s4828_s30, 0  ;;  %p4419_p4 = scmp.lt.s32.totalorder %s4828_s30, 4 }
  0x5f   : > { %s5034_s16 = scalar_select %p31_p12, %s4824_s29, %s33_s27  }
  0x60   : > { %p42_p6 = por %p41_p2, %p40_p1  ;;  %p5716_p8 = scmp.eq.s32.totalorder %s4922_s9, 3 }
  0x61   : > { %s294_s20 = sand.u32 1, %s4824_s29   ;;  %s4378_s21 = smul.u32 5376, %s4828_s30 }
  0x62   : > { %p5038_p11 = por %p5716_p8, %p40_p1  ;;  %s4377_s22 = smul.u32 336, %s294_s20 }
  0x63   : > { %p5044_p13 = pnand %p4419_p4, %p42_p6  ;;  %s5051_s23 = scalar_lea.hbm %s5691_s0, %s4378_s21 }
  0x64   : > { %s298_s10 = scalar_lea.vmem [#allocation3], %s4377_s22  ;;  %s5055_s18 = scalar_lea.sflag [#allocation4], %s294_s20 }
  0x65   : > { %s305_s15 = sshll.u32 %s298_s10, 4  ;;  %s4716_s14 = scalar_lea.hbm %s5051_s23, 5376  ;;  %s5053_s15 = int_to_ptr.vmem [resolvable:$true] %s305_s15 }
  0x66   : > { %p4717_p10 = scmp.ne.s32.totalorder %s5051_s23, %s4716_s14  ;;  %p4718_p0 = pneg %p5044_p13 }
  0x67   : > { %s4721_s27 = scalar_lea.hbm %s5691_s0, 21504  ;;  %p4722_p7 = scmp.lt.u32.totalorder %s5051_s23, %s5691_s0 }
  0x68   : > { %p4719_p3 = pnand %p4718_p0, %p4717_p10  ;;  %p4723_p9 = scmp.lt.u32.totalorder %s4721_s27, %s4716_s14 }
  0x69   : > { %p4725_p1 = scmp.lt.u32.totalorder %s4716_s14, %s5051_s23 }
  0x6a   : > { %p4720_p5 = pneg %p4719_p3  ;;  %p4724_p12 = por %p4723_p9, %p4722_p7 }
  0x6c   : > { %p4726_p2 = por %p4725_p1, %p4724_p12 }
  0x6e   : > { %p4727_p4 = pnand %p4726_p2, %p4720_p5 }
  0x70   : > { %4730 = shalt.err (!%p4727_p4)
}
  0x71   : > { %s4731_s20 = scalar_lea.vmem %s5053_s15, 5376  ;;  %s4845_s22 = smov [#allocation3]  }
  0x72   : > { %p4732_p6 = scmp.ne.s32.totalorder %s5053_s15, %s4731_s20  ;;  %s4736_s12 = sshll.u32 %s4845_s22, 4  ;;  %s4737_s12 = int_to_ptr.vmem [resolvable:$false] %s4736_s12 }
  0x73   : > { %s4738_s10 = scalar_lea.vmem %s4737_s12, 10752  ;;  %p4739_p3 = scmp.lt.s32.totalorder %s5053_s15, %s4737_s12 }
  0x74   : > { %p4734_p8 = pnand %p4732_p6, %p4718_p0  ;;  %p4740_p7 = scmp.lt.s32.totalorder %s4738_s10, %s4731_s20 }
  0x76   : > { %p4735_p10 = pneg %p4734_p8  ;;  %p4741_p9 = por %p4740_p7, %p4739_p3 }
  0x78   : > { %p4742_p12 = pnand %p4741_p9, %p4735_p10 }
  0x7a   : > { %4745 = shalt.err (!%p4742_p12)
}
  0x7b   : > { %s5719_s14 = smov 8   ;;  %s5720_s17 = smov 128  }
  0x7c   : > { %4411 = dma.hbm_to_vmem [thread:$0]  (!%p5044_p13), %s5051_s23, 5376, %s5053_s15, %s5055_s18, %s5720_s17, %s5720_s17, %s5719_s14  }
  0x7d   : > { %p5721_p0 = scmp.ne.s32.totalorder %s5712_s13, 0 }
  0x7e   : > { %s5089_s1 = sand.u32 (!%p5721_p0), 1, %s4820_s28   ;;  %p5722_p5 = scmp.ne.s32.totalorder (!%p5721_p0), %s5709_s11, 0 }
  0x7f   : > { %317 = sbr.rel (%p5721_p0) target bundleno = 970 (0x3ca), region = 52  ;;  %s320_s21 = scalar_lea.sflag (!%p5721_p0), [#allocation4], %s5089_s1 }
  0x80   : > { %s4379_s27 = smul.u32 (!%p5721_p0), 336, %s5089_s1 }
  0x82   : > { %s5093_s19 = scalar_lea.vmem (!%p5721_p0), [#allocation3], %s4379_s27 }
  0x86   : > { %4799 = dma.done.wait (%p5722_p5), %s320_s21, 5376  }
  0x87   : > { %4801 = vsyncadd (%p5722_p5), %s320_s21, 4294961920  ;;  %p5723_p13 = scmp.eq.s32.totalorder %s4922_s9, 0 }
  0x89   : > { %4803 = dma.done.wait (%p5723_p13), [#allocation7], 9984   ;;  %p5724_p1 = pmov %p5723_p13 }
  0x8b   : > { %4805 = vsyncadd (%p5724_p1), [#allocation7], 4294957312  ;;  %p5725_p2 = pmov %p5724_p1 }
  0x8c   : > { %p5726_p4 = pmov %p5724_p1 }
  0x8d   : > { %4807 = dma.done.wait (%p5725_p2), [#allocation10], 9216  }
  0x8e   : > { %4809 = vsyncadd (%p5726_p4), [#allocation10], 4294958080  ;;  %s4380_s13 = smul.u32 192, %s5089_s1  ;;  %p369_p6 = scmp.lt.s32.totalorder %s4922_s9, 0  ;;  %v4846_v0 = vmov 0.0  }
  0x8f   : > { %s370_s11 = ssub.s32 0, %s4922_s9  ;;  %381 = vst [vmem:[#allocation2 + $0x18] sm:$0xff] %v4846_v0  ;;  %382 = vst [vmem:[#allocation2 + $0x20] sm:$0xff] %v4846_v0  ;;  %s5115_s22 = smov 0  }
  0x90   : > { %383 = vst [vmem:[#allocation2 + $0x28] sm:$0xff] %v4846_v0  ;;  %384 = vst [vmem:[#allocation2 + $0x120] sm:$0xff] %v4846_v0  ;;  %s3201_s26 = smin.u32 %s4922_s9, %s370_s11  ;;  %s5113_s20 = scalar_lea.vmem [#allocation11], %s4380_s13 }
  0x91   : > { %385 = vst [vmem:[#allocation2 + $0x128] sm:$0xff] %v4846_v0  ;;  %386 = vst [vmem:[#allocation2 + $0x130] sm:$0xff] %v4846_v0  ;;  %s372_s23 = sand.u32 1, %s3201_s26  }
  0x92   : > { %s373_s15 = ssub.s32 0, %s372_s23 }
  0x93   : > { %s5735_s15 = smov (!%p369_p6, %s373_s15), %s372_s23 }
  0x94   : > { %p3203_p8 = scmp.lt.s32.totalorder %s5735_s15, 0  ;;  %s379_s18 = sadd.s32 2, %s5735_s15 }
  0x96   : > { %s5737_s18 = smov (!%p3203_p8, %s379_s18), %s5735_s15 }
  0x97 LB: >> { %v4488_v1 = vld [vmem:[#allocation8 + $0x40] sm:$0xff]   ;;  %v4847_v2 = vmov 0.0   ;;  %v4490_v4 = vld [vmem:[#allocation8 + $0x48] sm:$0xff]   ;;  %vm4848_vm0 = vmmov 0   ;;  %v4492_v6 = vld [vmem:[#allocation8 + $0x50] sm:$0xff]   ;;  %s3062_s12 = smul.u32 48, %s4832_s22  ;;  %s4832_s22 = sphi %s5115_s22, %s392_s22  }
  0x98   : >> { %3669 = vmatprep.subr.bf16.mxu1 %v4847_v2  ;;  %3781 = vmatprep.subr.bf16.mxu0 %v4847_v2  ;;  %v4489_v3 = vld [vmem:[#allocation8 + $0x100] sm:$0xff]   ;;  %v4491_v5 = vld [vmem:[#allocation8 + $0x108] sm:$0xff]   ;;  %v4493_v7 = vld [vmem:[#allocation8 + $0x110] sm:$0xff]   ;;  %s392_s22 = sadd.s32 1, %s4832_s22  }
  0x99   : >> { %3670 = vmatpush3.bf16.msra.mxu1 %v4488_v1  ;;  %3685 = vmatprep.mubr.msk.bf16.mxu1 %vm4848_vm0, %v4847_v2  ;;  %v4494_v8 = vld [vmem:[#allocation8 + $0x58] sm:$0xff]   ;;  %v4496_v10 = vld [vmem:[#allocation8 + $0x60] sm:$0xff]   ;;  %v4498_v12 = vld [vmem:[#allocation8 + $0x68] sm:$0xff]   ;;  %s5140_s10 = scalar_lea.vmem %s5093_s19, %s3062_s12 [#allocation3]  ;;  %s3090_s13 = scalar_lea.vmem [#allocation2], %s3062_s12 }
  0x9a   : >> { %3782 = vmatpush3.bf16.msra.mxu0 %v4489_v3  ;;  %3671 = vmatprep.subr.bf16.mxu1 %v4847_v2  ;;  %v4495_v9 = vld [vmem:[#allocation8 + $0x118] sm:$0xff]   ;;  %v4497_v11 = vld [vmem:[#allocation8 + $0x120] sm:$0xff]   ;;  %v4499_v13 = vld [vmem:[#allocation8 + $0x128] sm:$0xff]   ;;  %p389_p10 = scmp.ge.s32.totalorder %s392_s22, 5  }
  0x9b   : >> { %3783 = vmatprep.subr.bf16.mxu0 %v4847_v2  ;;  %3797 = vmatprep.mubr.msk.bf16.mxu0 %vm4848_vm0, %v4847_v2  ;;  %v4500_v14 = vld [vmem:[#allocation8 + $0x70] sm:$0xff]   ;;  %v4502_v16 = vld [vmem:[#allocation8 + $0x78] sm:$0xff]   ;;  %v3211_v19 = vld [vmem:[%s5140_s10 + $0x20] sm:$0xff]  ;;  %p3338_p3 = scmp.ne.s32.totalorder (%p389_p10), %s5737_s18, 0 }
  0x9c   : >> { %v4501_v15 = vld [vmem:[#allocation8 + $0x130] sm:$0xff]   ;;  %v4503_v17 = vld [vmem:[#allocation8 + $0x138] sm:$0xff]   ;;  %v4504_v23 = vld [vmem:[#allocation8] sm:$0xff]  }
  0x9d   : >> { %3672 = vmatpush3.bf16.msra.mxu1 %v4490_v4  ;;  %v3210_v18 = vld [vmem:[%s5140_s10 + $0x18] sm:$0xff]  ;;  %v3260_v20 = vld [vmem:[%s5140_s10 + $0x30] sm:$0xff]  ;;  %v4505_v25 = vld [vmem:[#allocation8 + $0x140] sm:$0xff]  }
  0x9e   : >> { %3784 = vmatpush3.bf16.msra.mxu0 %v4491_v5  ;;  %3673 = vmatprep.subr.bf16.mxu1 %v4847_v2  ;;  %v3261_v21 = vld [vmem:[%s5140_s10 + $0x38] sm:$0xff]  ;;  %v429_v22 = vpack.c.bf16 %v3211_v19, %v3210_v18  ;;  %v5152_v26 = vld [vmem:[%s5140_s10 + $0x48] sm:$0xff]  ;;  %v5155_v27 = vld [vmem:[%s5140_s10 + $0x50] sm:$0xff] }
  0x9f   : >> { %3785 = vmatprep.subr.bf16.mxu0 %v4847_v2  ;;  %v945_v24 = vpack.c.bf16 %v3261_v21, %v3260_v20  ;;  %v1362_v28 = vpack.c.bf16 %v5155_v27, %v5152_v26  ;;  %v4506_v29 = vld [vmem:[#allocation8 + $0x8] sm:$0xff]   ;;  %v3262_v32 = vld [vmem:[%s5140_s10 + $0x40] sm:$0xff]  ;;  %v4508_v34 = vld [vmem:[#allocation8 + $0x10] sm:$0xff]  }
  0xa0   : >> { %v3212_v30 = vld [vmem:[%s5140_s10 + $0x28] sm:$0xff]  ;;  %v946_v35 = vpack.c.bf16 %v5152_v26, %v3262_v32  ;;  %v4509_v36 = vld [vmem:[#allocation8 + $0x150] sm:$0xff]   ;;  %v4510_v37 = vld [vmem:[#allocation8 + $0x18] sm:$0xff]   ;;  %v431_v40 = vpack.c.bf16 %v3262_v32, %v3261_v21 }
  0xa1   : >> { %3674 = vmatpush3.bf16.msra.mxu1 %v4492_v6  ;;  %v4507_v31 = vld [vmem:[#allocation8 + $0x148] sm:$0xff]   ;;  %v430_v33 = vpack.c.bf16 %v3260_v20, %v3212_v30  ;;  %v4511_v38 = vld [vmem:[#allocation8 + $0x158] sm:$0xff]   ;;  %v4512_v41 = vld [vmem:[#allocation8 + $0x20] sm:$0xff]  }
  0xa2   : >> { %3786 = vmatpush3.bf16.msra.mxu0 %v4493_v7  ;;  %3675 = vmatprep.subr.bf16.mxu1 %v4847_v2  ;;  %v5173_v39 = vld [vmem:[%s5140_s10 + $0x58] sm:$0xff]  ;;  %v4513_v43 = vld [vmem:[#allocation8 + $0x160] sm:$0xff]   ;;  %v4514_v44 = vld [vmem:[#allocation8 + $0x28] sm:$0xff]  }
  0xa3   : >> { %3787 = vmatprep.subr.bf16.mxu0 %v4847_v2  ;;  %v947_v42 = vpack.c.bf16 %v5173_v39, %v5155_v27  ;;  %v4515_v45 = vld [vmem:[#allocation8 + $0x168] sm:$0xff]   ;;  %v5189_v47 = vld [vmem:[%s5140_s10 + $0x51] sm:$0xff]  ;;  %v3205_v54 = vld [vmem:[%s5140_s10 + $0x1f] sm:$0xff] }
  0xa4   : >> { %v5186_v46 = vld [vmem:[%s5140_s10 + $0x49] sm:$0xff]  ;;  %v4518_v51 = vld [vmem:[#allocation8 + $0x38] sm:$0xff]   ;;  %v4520_v58 = vld [vmem:[#allocation8 + $0x80] sm:$0xff]  }
  0xa5   : >> { %3676 = vmatpush3.bf16.msra.mxu1 %v4494_v8  ;;  %v1501_v48 = vpack.c.bf16 %v5189_v47, %v5186_v46  ;;  %v4516_v49 = vld [vmem:[#allocation8 + $0x30] sm:$0xff]   ;;  %v4519_v53 = vld [vmem:[#allocation8 + $0x178] sm:$0xff]   ;;  %v4521_v60 = vld [vmem:[#allocation8 + $0x180] sm:$0xff]  }
  0xa6   : >> { %3788 = vmatpush3.bf16.msra.mxu0 %v4495_v9  ;;  %3677 = vmatprep.subr.bf16.mxu1 %v4847_v2  ;;  %v4517_v50 = vld [vmem:[#allocation8 + $0x170] sm:$0xff]   ;;  %v5207_v56 = vld [vmem:[%s5140_s10 + $0x39] sm:$0xff]  ;;  %v4522_v61 = vld [vmem:[#allocation8 + $0x88] sm:$0xff]  }
  0xa7   : >> { %3789 = vmatprep.subr.bf16.mxu0 %v4847_v2  ;;  %v3204_v52 = vld [vmem:[%s5140_s10 + $0x17] sm:$0xff]  ;;  %v4523_v62 = vld [vmem:[#allocation8 + $0x188] sm:$0xff]   ;;  %v4536_v30 = vld [vmem:[#allocation8 + $0xc0] sm:$0xff]  }
  0xa8   : >> { %v5203_v55 = vld [vmem:[%s5140_s10 + $0x31] sm:$0xff]  ;;  %v402_v57 = vpack.c.bf16 %v3205_v54, %v3204_v52  ;;  %v3206_v63 = vld [vmem:[%s5140_s10 + $0x27] sm:$0xff]  ;;  %v3232_v21 = vld [vmem:[%s5140_s10 + $0x19] sm:$0xff] }
  0xa9   : >> { %3678 = vmatpush3.bf16.msra.mxu1 %v4496_v10  ;;  %v1084_v59 = vpack.c.bf16 %v5207_v56, %v5203_v55  ;;  %v5216_v0 = vld [vmem:[%s5140_s10 + $0x2f] sm:$0xff]  ;;  %v5220_v1 = vld [vmem:[%s5140_s10 + $0x41] sm:$0xff]  ;;  %v4526_v7 = vld [vmem:[#allocation8 + $0x98] sm:$0xff]  }
  0xaa   : >> { %3790 = vmatpush3.bf16.msra.mxu0 %v4497_v11  ;;  %3679 = vmatprep.subr.bf16.mxu1 %v4847_v2  ;;  %v403_v3 = vpack.c.bf16 %v5216_v0, %v3206_v63  ;;  %v4524_v4 = vld [vmem:[#allocation8 + $0x90] sm:$0xff]   ;;  %v1085_v5 = vpack.c.bf16 %v5186_v46, %v5220_v1  ;;  %v4527_v8 = vld [vmem:[#allocation8 + $0x198] sm:$0xff]   ;;  %v4537_v32 = vld [vmem:[#allocation8 + $0x1c0] sm:$0xff]  }
  0xab   : >> { %3791 = vmatprep.subr.bf16.mxu0 %v4847_v2  ;;  %v4525_v6 = vld [vmem:[#allocation8 + $0x190] sm:$0xff]   ;;  %v5236_v10 = vld [vmem:[%s5140_s10 + $0x3f] sm:$0xff]  ;;  %v4546_v54 = vld [vmem:[#allocation8 + $0xe8] sm:$0xff]  }
  0xac   : >> { %v5233_v9 = vld [vmem:[%s5140_s10 + $0x37] sm:$0xff]  ;;  %v3305_v63 = vld [vmem:[%s5140_s10 + $0x60] sm:$0xff] }
  0xad   : >> { %3680 = vmatpush3.bf16.msra.mxu1 %v4498_v12  ;;  %v5240_v11 = vld [vmem:[%s5140_s10 + $0x59] sm:$0xff]  ;;  %v404_v12 = vpack.c.bf16 %v5236_v10, %v5233_v9  ;;  %v4532_v18 = vld [vmem:[#allocation8 + $0xb0] sm:$0xff]   ;;  %v1363_v27 = vpack.c.bf16 %v3305_v63, %v5173_v39 }
  0xae   : >> { %3792 = vmatpush3.bf16.msra.mxu0 %v4499_v13  ;;  %3681 = vmatprep.subr.bf16.mxu1 %v4847_v2  ;;  %v4528_v13 = vld [vmem:[#allocation8 + $0xa0] sm:$0xff]   ;;  %v4533_v19 = vld [vmem:[#allocation8 + $0x1b0] sm:$0xff]   ;;  %v4534_v20 = vld [vmem:[#allocation8 + $0xb8] sm:$0xff]  }
  0xaf   : >> { %3793 = vmatprep.subr.bf16.mxu0 %v4847_v2 }
  0xb1   : >> { %3682 = vmatpush3.bf16.msra.mxu1 %v4500_v14  ;;  %v1086_v14 = vpack.c.bf16 %v5240_v11, %v5189_v47 }
  0xb2   : >> { %3794 = vmatpush3.bf16.msra.mxu0 %v4501_v15  ;;  %3683 = vmatprep.subr.bf16.mxu1 %v4847_v2  ;;  %v4529_v15 = vld [vmem:[#allocation8 + $0x1a0] sm:$0xff]  }
  0xb3   : >> { %3795 = vmatprep.subr.bf16.mxu0 %v4847_v2 }
  0xb5   : >> { %3684 = vmatpush3.bf16.msra.mxu1 %v4502_v16  ;;  %v4530_v16 = vld [vmem:[#allocation8 + $0xa8] sm:$0xff]  }
  0xb6   : >> { %3796 = vmatpush3.bf16.msra.mxu0 %v4503_v17  ;;  %3697 = vmatprep.subr.bf16.mxu1 %v4847_v2  ;;  %v4531_v17 = vld [vmem:[#allocation8 + $0x1a8] sm:$0xff]  }
  0xb7   : >> { %3809 = vmatprep.subr.bf16.mxu0 %v4847_v2 }
  0xb8   : >> { %3686 = vmatmul.mubr.bf16.vlgmr.msra.gmra.mrb[0].mxu1 %v429_v22  ;;  %v3233_v22 = vld [vmem:[%s5140_s10 + $0x21] sm:$0xff] }
  0xb9   : >> { %3698 = vmatpush3.bf16.msra.mxu1 %v4504_v23  ;;  %3798 = vmatmul.mubr.bf16.vlgmr.msra.gmra.mrb[0].mxu0 %v945_v24  ;;  %v4535_v23 = vld [vmem:[#allocation8 + $0x1b8] sm:$0xff]   ;;  %v5265_v24 = vld [vmem:[%s5140_s10 + $0x47] sm:$0xff] }
  0xba   : >> { %3810 = vmatpush3.bf16.msra.mxu0 %v4505_v25  ;;  %3699 = vmatprep.subr.bf16.mxu1 %v4847_v2  ;;  %v5268_v25 = vld [vmem:[%s5140_s10 + $0x4f] sm:$0xff]  ;;  %v807_v26 = vpack.c.bf16 %v5265_v24, %v5236_v10 }
  0xbb   : >> { %3811 = vmatprep.subr.bf16.mxu0 %v4847_v2  ;;  %3689 = vmatprep.mubr.msk.bf16.mxu1 %vm4848_vm0, %v4847_v2 }
  0xbc   : >> { %3801 = vmatprep.mubr.msk.bf16.mxu0 %vm4848_vm0, %v4847_v2 }
  0xbd   : >> { %3700 = vmatpush3.bf16.msra.mxu1 %v4506_v29  ;;  %v667_v29 = vpack.c.bf16 %v3233_v22, %v3232_v21 }
  0xbe   : >> { %3812 = vmatpush3.bf16.msra.mxu0 %v4507_v31  ;;  %3701 = vmatprep.subr.bf16.mxu1 %v4847_v2  ;;  %v1223_v31 = vpack.c.bf16 %v5268_v25, %v5265_v24 }
  0xbf   : >> { %3813 = vmatprep.subr.bf16.mxu0 %v4847_v2 }
  0xc0   : >> { %3690 = vmatmul.mubr.bf16.gmra.mrb[4].mxu1 %v430_v33  ;;  %v4538_v33 = vld [vmem:[#allocation8 + $0xc8] sm:$0xff]  }
  0xc1   : >> { %3702 = vmatpush3.bf16.msra.mxu1 %v4508_v34  ;;  %3802 = vmatmul.mubr.bf16.gmra.mrb[4].mxu0 %v946_v35  ;;  %v3234_v34 = vld [vmem:[%s5140_s10 + $0x29] sm:$0xff] }
  0xc2   : >> { %3814 = vmatpush3.bf16.msra.mxu0 %v4509_v36  ;;  %3703 = vmatprep.subr.bf16.mxu1 %v4847_v2  ;;  %v4539_v35 = vld [vmem:[#allocation8 + $0x1c8] sm:$0xff]   ;;  %v5278_v36 = vld [vmem:[%s5140_s10 + $0x57] sm:$0xff] }
  0xc3   : >> { %3815 = vmatprep.subr.bf16.mxu0 %v4847_v2  ;;  %3693 = vmatprep.mubr.msk.bf16.mxu1 %vm4848_vm0, %v4847_v2  ;;  %v808_v39 = vpack.c.bf16 %v5278_v36, %v5268_v25 }
  0xc4   : >> { %3805 = vmatprep.mubr.msk.bf16.mxu0 %vm4848_vm0, %v4847_v2 }
  0xc5   : >> { %3704 = vmatpush3.bf16.msra.mxu1 %v4510_v37  ;;  %v3291_v37 = vld [vmem:[%s5140_s10 + $0x5f] sm:$0xff] }
  0xc6   : >> { %3816 = vmatpush3.bf16.msra.mxu0 %v4511_v38  ;;  %3705 = vmatprep.subr.bf16.mxu1 %v4847_v2  ;;  %v668_v38 = vpack.c.bf16 %v5203_v55, %v3234_v34  ;;  %v4547_v55 = vld [vmem:[#allocation8 + $0x1e8] sm:$0xff]  }
  0xc7   : >> { %3817 = vmatprep.subr.bf16.mxu0 %v4847_v2 }
  0xc8   : >> { %3694 = vmatmul.mubr.bf16.gmra.mrb[8].mxu1 %v431_v40  ;;  %v4540_v40 = vld [vmem:[#allocation8 + $0xd0] sm:$0xff]  }
  0xc9   : >> { %3706 = vmatpush3.bf16.msra.mxu1 %v4512_v41  ;;  %3806 = vmatmul.mubr.bf16.gmra.mrb[8].mxu0 %v947_v42  ;;  %v1224_v41 = vpack.c.bf16 %v3291_v37, %v5278_v36  ;;  %v4541_v42 = vld [vmem:[#allocation8 + $0x1d0] sm:$0xff]   ;;  %v3330_v37 = vld [vmem:[%s5694_s3] ss:$0 sm:$0xff] }
  0xca   : >> { %3818 = vmatpush3.bf16.msra.mxu0 %v4513_v43  ;;  %3707 = vmatprep.subr.bf16.mxu1 %v4847_v2  ;;  %v4542_v43 = vld [vmem:[#allocation8 + $0xd8] sm:$0xff]  }
  0xcb   : >> { %3819 = vmatprep.subr.bf16.mxu0 %v4847_v2  ;;  %3713 = vmatprep.mubr.msk.bf16.mxu1 %vm4848_vm0, %v4847_v2 }
  0xcc   : >> { %3825 = vmatprep.mubr.msk.bf16.mxu0 %vm4848_vm0, %v4847_v2 }
  0xcd   : >> { %3708 = vmatpush3.bf16.msra.mxu1 %v4514_v44  ;;  %v4543_v44 = vld [vmem:[#allocation8 + $0x1d8] sm:$0xff]  }
  0xce   : >> { %3820 = vmatpush3.bf16.msra.mxu0 %v4515_v45  ;;  %3709 = vmatprep.subr.bf16.mxu1 %v4847_v2  ;;  %v3292_v45 = vld [vmem:[%s5140_s10 + $0x67] sm:$0xff] }
  0xcf   : >> { %3821 = vmatprep.subr.bf16.mxu0 %v4847_v2 }
  0xd1   : >> { %3710 = vmatpush3.bf16.msra.mxu1 %v4516_v49  ;;  %v3293_v49 = vld [vmem:[%s5140_s10 + $0x6f] sm:$0xff] }
  0xd2   : >> { %3822 = vmatpush3.bf16.msra.mxu0 %v4517_v50  ;;  %3711 = vmatprep.subr.bf16.mxu1 %v4847_v2  ;;  %v669_v50 = vpack.c.bf16 %v5220_v1, %v5207_v56  ;;  %v1225_v52 = vpack.c.bf16 %v3293_v49, %v3292_v45  ;;  %v4548_v56 = vld [vmem:[#allocation8 + $0xf0] sm:$0xff]   ;;  %v3306_v1 = vld [vmem:[%s5140_s10 + $0x68] sm:$0xff] }
  0xd3   : >> { %3823 = vmatprep.subr.bf16.mxu0 %v4847_v2 }
  0xd5   : >> { %3712 = vmatpush3.bf16.msra.mxu1 %v4518_v51  ;;  %v4544_v51 = vld [vmem:[#allocation8 + $0xe0] sm:$0xff]  }
  0xd6   : >> { %3824 = vmatpush3.bf16.msra.mxu0 %v4519_v53  ;;  %3725 = vmatprep.subr.bf16.mxu1 %v4847_v2  ;;  %v4545_v53 = vld [vmem:[#allocation8 + $0x1e0] sm:$0xff]  }
  0xd7   : >> { %3837 = vmatprep.subr.bf16.mxu0 %v4847_v2 }
  0xd8   : >> { %3714 = vmatmul.mubr.bf16.vlgmr.msra.gmra.mrb[0].mxu1 %v402_v57  ;;  %v4549_v57 = vld [vmem:[#allocation8 + $0x1f0] sm:$0xff]  }
  0xd9   : >> { %3726 = vmatpush3.bf16.msra.mxu1 %v4520_v58  ;;  %3826 = vmatmul.mubr.bf16.vlgmr.msra.gmra.mrb[0].mxu0 %v1084_v59  ;;  %v4550_v58 = vld [vmem:[#allocation8 + $0xf8] sm:$0xff]  }
  0xda   : >> { %3838 = vmatpush3.bf16.msra.mxu0 %v4521_v60  ;;  %3727 = vmatprep.subr.bf16.mxu1 %v4847_v2  ;;  %v4551_v59 = vld [vmem:[#allocation8 + $0x1f8] sm:$0xff]   ;;  %v806_v60 = vpack.c.bf16 %v5233_v9, %v5216_v0  ;;  %v3319_v9 = vld [vmem:[%s5140_s10 + $0x61] sm:$0xff] }
  0xdb   : >> { %3839 = vmatprep.subr.bf16.mxu0 %v4847_v2  ;;  %3717 = vmatprep.mubr.msk.bf16.mxu1 %vm4848_vm0, %v4847_v2  ;;  %v4555_v0 = vld [vmem:[#allocation8 + $0x218] sm:$0xff]   ;;  %v1502_v10 = vpack.c.bf16 %v3319_v9, %v5240_v11 }
  0xdc   : >> { %3829 = vmatprep.mubr.msk.bf16.mxu0 %vm4848_vm0, %v4847_v2  ;;  %v1677_v9 = vld [vmem:[#allocation6 + $0x8] sm:$0xff] }
  0xdd   : >> { %3728 = vmatpush3.bf16.msra.mxu1 %v4522_v61  ;;  %v4552_v61 = vld [vmem:[#allocation8 + $0x200] sm:$0xff]  }
  0xde   : >> { %3840 = vmatpush3.bf16.msra.mxu0 %v4523_v62  ;;  %3729 = vmatprep.subr.bf16.mxu1 %v4847_v2  ;;  %v4553_v62 = vld [vmem:[#allocation8 + $0x208] sm:$0xff]  }
  0xdf   : >> { %3841 = vmatprep.subr.bf16.mxu0 %v4847_v2 }
  0xe0   : >> { %3718 = vmatmul.mubr.bf16.gmra.mrb[4].mxu1 %v403_v3  ;;  %v3307_v3 = vld [vmem:[%s5140_s10 + $0x70] sm:$0xff] }
  0xe1   : >> { %3730 = vmatpush3.bf16.msra.mxu1 %v4524_v4  ;;  %3830 = vmatmul.mubr.bf16.gmra.mrb[4].mxu0 %v1085_v5  ;;  %v1364_v4 = vpack.c.bf16 %v3307_v3, %v3306_v1  ;;  %v4556_v5 = vld [vmem:[#allocation8 + $0x220] sm:$0xff]  }
  0xe2   : >> { %3842 = vmatpush3.bf16.msra.mxu0 %v4525_v6  ;;  %3731 = vmatprep.subr.bf16.mxu1 %v4847_v2  ;;  %v4557_v6 = vld [vmem:[#allocation8 + $0x228] sm:$0xff]  }
  0xe3   : >> { %3843 = vmatprep.subr.bf16.mxu0 %v4847_v2  ;;  %3721 = vmatprep.mubr.msk.bf16.mxu1 %vm4848_vm0, %v4847_v2 }
  0xe4   : >> { %3833 = vmatprep.mubr.msk.bf16.mxu0 %vm4848_vm0, %v4847_v2 }
  0xe5   : >> { %3732 = vmatpush3.bf16.msra.mxu1 %v4526_v7  ;;  %v4558_v7 = vld [vmem:[#allocation8 + $0x230] sm:$0xff]  }
  0xe6   : >> { %3844 = vmatpush3.bf16.msra.mxu0 %v4527_v8  ;;  %3733 = vmatprep.subr.bf16.mxu1 %v4847_v2  ;;  %v4559_v8 = vld [vmem:[#allocation8 + $0x238] sm:$0xff]  }
  0xe7   : >> { %3845 = vmatprep.subr.bf16.mxu0 %v4847_v2 }
  0xe8   : >> { %3722 = vmatmul.mubr.bf16.gmra.mrb[8].mxu1 %v404_v12  ;;  %v3320_v12 = vld [vmem:[%s5140_s10 + $0x69] sm:$0xff] }
  0xe9   : >> { %3734 = vmatpush3.bf16.msra.mxu1 %v4528_v13  ;;  %3834 = vmatmul.mubr.bf16.gmra.mrb[8].mxu0 %v1086_v14  ;;  %v3321_v13 = vld [vmem:[%s5140_s10 + $0x71] sm:$0xff] }
  0xea   : >> { %3846 = vmatpush3.bf16.msra.mxu0 %v4529_v15  ;;  %3735 = vmatprep.subr.bf16.mxu1 %v4847_v2  ;;  %v1503_v14 = vpack.c.bf16 %v3321_v13, %v3320_v12 }
  0xeb   : >> { %3847 = vmatprep.subr.bf16.mxu0 %v4847_v2  ;;  %3741 = vmatprep.mubr.msk.bf16.mxu1 %vm4848_vm0, %v4847_v2 }
  0xec   : >> { %3853 = vmatprep.mubr.msk.bf16.mxu0 %vm4848_vm0, %v4847_v2 }
  0xed   : >> { %3736 = vmatpush3.bf16.msra.mxu1 %v4530_v16 }
  0xee   : >> { %3848 = vmatpush3.bf16.msra.mxu0 %v4531_v17  ;;  %3737 = vmatprep.subr.bf16.mxu1 %v4847_v2 }
  0xef   : >> { %3849 = vmatprep.subr.bf16.mxu0 %v4847_v2 }
  0xf1   : >> { %3738 = vmatpush3.bf16.msra.mxu1 %v4532_v18 }
  0xf2   : >> { %3850 = vmatpush3.bf16.msra.mxu0 %v4533_v19  ;;  %3739 = vmatprep.subr.bf16.mxu1 %v4847_v2 }
  0xf3   : >> { %3851 = vmatprep.subr.bf16.mxu0 %v4847_v2 }
  0xf5   : >> { %3740 = vmatpush3.bf16.msra.mxu1 %v4534_v20 }
  0xf6   : >> { %3852 = vmatpush3.bf16.msra.mxu0 %v4535_v23  ;;  %3753 = vmatprep.subr.bf16.mxu1 %v4847_v2 }
  0xf7   : >> { %3865 = vmatprep.subr.bf16.mxu0 %v4847_v2 }
  0xf8   : >> { %3742 = vmatmul.mubr.bf16.vlgmr.msra.gmra.mrb[0].mxu1 %v667_v29 }
  0xf9   : >> { %3754 = vmatpush3.bf16.msra.mxu1 %v4536_v30  ;;  %3854 = vmatmul.mubr.bf16.vlgmr.msra.gmra.mrb[0].mxu0 %v1223_v31 }
  0xfa   : >> { %3866 = vmatpush3.bf16.msra.mxu0 %v4537_v32  ;;  %3755 = vmatprep.subr.bf16.mxu1 %v4847_v2 }
  0xfb   : >> { %3867 = vmatprep.subr.bf16.mxu0 %v4847_v2  ;;  %3745 = vmatprep.mubr.msk.bf16.mxu1 %vm4848_vm0, %v4847_v2 }
  0xfc   : >> { %3857 = vmatprep.mubr.msk.bf16.mxu0 %vm4848_vm0, %v4847_v2 }
  0xfd   : >> { %3756 = vmatpush3.bf16.msra.mxu1 %v4538_v33 }
  0xfe   : >> { %3868 = vmatpush3.bf16.msra.mxu0 %v4539_v35  ;;  %3757 = vmatprep.subr.bf16.mxu1 %v4847_v2 }
  0xff   : >> { %3869 = vmatprep.subr.bf16.mxu0 %v4847_v2 }
 0x100   : >> { %3746 = vmatmul.mubr.bf16.gmra.mrb[4].mxu1 %v668_v38 }
 0x101   : >> { %3758 = vmatpush3.bf16.msra.mxu1 %v4540_v40  ;;  %3858 = vmatmul.mubr.bf16.gmra.mrb[4].mxu0 %v1224_v41 }
 0x102   : >> { %3870 = vmatpush3.bf16.msra.mxu0 %v4541_v42  ;;  %3759 = vmatprep.subr.bf16.mxu1 %v4847_v2 }
 0x103   : >> { %3871 = vmatprep.subr.bf16.mxu0 %v4847_v2  ;;  %3749 = vmatprep.mubr.msk.bf16.mxu1 %vm4848_vm0, %v4847_v2 }
 0x104   : >> { %3861 = vmatprep.mubr.msk.bf16.mxu0 %vm4848_vm0, %v4847_v2 }
 0x105   : >> { %3760 = vmatpush3.bf16.msra.mxu1 %v4542_v43 }
 0x106   : >> { %3872 = vmatpush3.bf16.msra.mxu0 %v4543_v44  ;;  %3761 = vmatprep.subr.bf16.mxu1 %v4847_v2  ;;  %v3331_v44 = vld [vmem:[%s5695_s4] ss:$0 sm:$0xff] }
 0x107   : >> { %3873 = vmatprep.subr.bf16.mxu0 %v4847_v2 }
 0x108   : >> { %3750 = vmatmul.mubr.bf16.gmra.mrb[8].mxu1 %v669_v50 }
 0x109   : >> { %3762 = vmatpush3.bf16.msra.mxu1 %v4544_v51  ;;  %3862 = vmatmul.mubr.bf16.gmra.mrb[8].mxu0 %v1225_v52 }
 0x10a   : >> { %3874 = vmatpush3.bf16.msra.mxu0 %v4545_v53  ;;  %3763 = vmatprep.subr.bf16.mxu1 %v4847_v2 }
 0x10b   : >> { %3875 = vmatprep.subr.bf16.mxu0 %v4847_v2  ;;  %3769 = vmatprep.mubr.msk.bf16.mxu1 %vm4848_vm0, %v4847_v2 }
 0x10c   : >> { %3881 = vmatprep.mubr.msk.bf16.mxu0 %vm4848_vm0, %v4847_v2 }
 0x10d   : >> { %3764 = vmatpush3.bf16.msra.mxu1 %v4546_v54 }
 0x10e   : >> { %3876 = vmatpush3.bf16.msra.mxu0 %v4547_v55  ;;  %3765 = vmatprep.subr.bf16.mxu1 %v4847_v2 }
 0x10f   : >> { %3877 = vmatprep.subr.bf16.mxu0 %v4847_v2 }
 0x111   : >> { %3766 = vmatpush3.bf16.msra.mxu1 %v4548_v56 }
 0x112   : >> { %3878 = vmatpush3.bf16.msra.mxu0 %v4549_v57  ;;  %3767 = vmatprep.subr.bf16.mxu1 %v4847_v2 }
 0x113   : >> { %3879 = vmatprep.subr.bf16.mxu0 %v4847_v2 }
 0x115   : >> { %3768 = vmatpush3.bf16.msra.mxu1 %v4550_v58 }
 0x116   : >> { %3880 = vmatpush3.bf16.msra.mxu0 %v4551_v59  ;;  %4173 = vmatprep.subr.bf16.mxu1 %v4847_v2 }
 0x117   : >> { %3893 = vmatprep.subr.bf16.mxu0 %v4847_v2 }
 0x118   : >> { %3770 = vmatmul.mubr.bf16.vlgmr.msra.gmra.mrb[0].mxu1 %v806_v60 }
 0x119   : >> { %3882 = vmatmul.mubr.bf16.vlgmr.msra.gmra.mrb[0].mxu0 %v1362_v28  ;;  %4181 = vmatpush3.bf16.msra.mxu1 %v4552_v61  ;;  %v4554_v28 = vld [vmem:[#allocation8 + $0x210] sm:$0xff]  }
 0x11a   : >> { %3894 = vmatpush3.bf16.msra.mxu0 %v4552_v61  ;;  %4174 = vmatprep.subr.bf16.mxu1 %v4847_v2 }
 0x11b   : >> { %3895 = vmatprep.subr.bf16.mxu0 %v4847_v2  ;;  %3773 = vmatprep.mubr.msk.bf16.mxu1 %vm4848_vm0, %v4847_v2 }
 0x11c   : >> { %3885 = vmatprep.mubr.msk.bf16.mxu0 %vm4848_vm0, %v4847_v2 }
 0x11d   : >> { %4182 = vmatpush3.bf16.msra.mxu1 %v4553_v62 }
 0x11e   : >> { %3896 = vmatpush3.bf16.msra.mxu0 %v4553_v62  ;;  %4175 = vmatprep.subr.bf16.mxu1 %v4847_v2  ;;  %v1678_v62 = vld [vmem:[#allocation6 + $0x10] sm:$0xff] }
 0x11f   : >> { %3897 = vmatprep.subr.bf16.mxu0 %v4847_v2 }
 0x120   : >> { %3774 = vmatmul.mubr.bf16.gmra.mrb[4].mxu1 %v807_v26 }
 0x121   : >> { %3886 = vmatmul.mubr.bf16.gmra.mrb[4].mxu0 %v1363_v27  ;;  %4183 = vmatpush3.bf16.msra.mxu1 %v4554_v28  ;;  %v1676_v27 = vld [vmem:[#allocation6] sm:$0xff] }
 0x122   : >> { %3898 = vmatpush3.bf16.msra.mxu0 %v4554_v28  ;;  %4176 = vmatprep.subr.bf16.mxu1 %v4847_v2 }
 0x123   : >> { %3899 = vmatprep.subr.bf16.mxu0 %v4847_v2  ;;  %3777 = vmatprep.mubr.msk.bf16.mxu1 %vm4848_vm0, %v4847_v2 }
 0x124   : >> { %3889 = vmatprep.mubr.msk.bf16.mxu0 %vm4848_vm0, %v4847_v2 }
 0x125   : >> { %4184 = vmatpush3.bf16.msra.mxu1 %v4555_v0 }
 0x126   : >> { %3900 = vmatpush3.bf16.msra.mxu0 %v4555_v0  ;;  %4177 = vmatprep.subr.bf16.mxu1 %v4847_v2 }
 0x127   : >> { %3901 = vmatprep.subr.bf16.mxu0 %v4847_v2 }
 0x128   : >> { %3778 = vmatmul.mubr.bf16.gmra.mrb[8].mxu1 %v808_v39  ;;  %v1679_v39 = vld [vmem:[#allocation6 + $0x18] sm:$0xff] }
 0x129   : >> { %3890 = vmatmul.mubr.bf16.gmra.mrb[8].mxu0 %v1364_v4  ;;  %4185 = vmatpush3.bf16.msra.mxu1 %v4556_v5 }
 0x12a   : >> { %3902 = vmatpush3.bf16.msra.mxu0 %v4556_v5  ;;  %4178 = vmatprep.subr.bf16.mxu1 %v4847_v2 }
 0x12b   : >> { %3903 = vmatprep.subr.bf16.mxu0 %v4847_v2  ;;  %3909 = vmatprep.mubr.msk.bf16.mxu0 %vm4848_vm0, %v4847_v2 }
 0x12c   : >> { %3913 = vmatprep.mubr.msk.bf16.mxu1 %vm4848_vm0, %v4847_v2 }
 0x12d   : >> { %4186 = vmatpush3.bf16.msra.mxu1 %v4557_v6 }
 0x12e   : >> { %3904 = vmatpush3.bf16.msra.mxu0 %v4557_v6  ;;  %4179 = vmatprep.subr.bf16.mxu1 %v4847_v2 }
 0x12f   : >> { %3905 = vmatprep.subr.bf16.mxu0 %v4847_v2 }
 0x131   : >> { %4187 = vmatpush3.bf16.msra.mxu1 %v4558_v7 }
 0x132   : >> { %3906 = vmatpush3.bf16.msra.mxu0 %v4558_v7  ;;  %4180 = vmatprep.subr.bf16.mxu1 %v4847_v2 }
 0x133   : >> { %3907 = vmatprep.subr.bf16.mxu0 %v4847_v2 }
 0x135   : >> { %4188 = vmatpush3.bf16.msra.mxu1 %v4559_v8 }
 0x136   : >> { %3908 = vmatpush3.bf16.msra.mxu0 %v4559_v8 }
 0x138   : >> { %3914 = vmatmul.mubr.bf16.vlgmr.msra.gmra.mrb[12].mxu1 %v1502_v10 }
 0x139   : >> { %3910 = vmatmul.mubr.bf16.vlgmr.msra.gmra.mrb[0].mxu0 %v1501_v48  ;;  %3917 = vmatprep.mubr.msk.bf16.mxu1 %vm4848_vm0, %v4847_v2 }
 0x140   : >> { %3918 = vmatmul.mubr.bf16.gmra.mrb[16].mxu1 %v1503_v14 }
 0x1eb   : >> { %v908_v15 = vpop.f32.mrb[0].mxu1 }
 0x1ec   : >> { %v3771_v16 = vpop.f32.mrb[1].mxu1 }
 0x1ed   : >> { %v911_v17 = vpop.f32.mrb[2].mxu1 }
 0x1ee   : >> { %v3772_v18 = vpop.f32.mrb[3].mxu1 }
 0x1f3   : >> { %v916_v19 = vpop.f32.mrb[4].mxu1 }
 0x1f4   : >> { %v1472_v11 = vpop.f32.mrb[4].mxu0  ;;  %v3775_v20 = vpop.f32.mrb[5].mxu1 }
 0x1f5   : >> { %v4191_v21 = vadd.f32 %v1472_v11, %v916_v19  ;;  %v3887_v22 = vpop.f32.mrb[5].mxu0  ;;  %v919_v23 = vpop.f32.mrb[6].mxu1 }
 0x1f6   : >> { %v1475_v24 = vpop.f32.mrb[6].mxu0  ;;  %v3776_v46 = vpop.f32.mrb[7].mxu1  ;;  %v1680_v22 = vld [vmem:[#allocation6 + $0x20] sm:$0xff] }
 0x1f7   : >> { %v4193_v47 = vadd.f32 %v1475_v24, %v919_v23  ;;  %v3888_v48 = vpop.f32.mrb[7].mxu0 }
 0x1fb   : >> { %v924_v25 = vpop.f32.mrb[8].mxu1 }
 0x1fc   : >> { %v1480_v2 = vpop.f32.mrb[8].mxu0  ;;  %v3779_v29 = vpop.f32.mrb[9].mxu1 }
 0x1fd   : >> { %v4195_v30 = vadd.f32 %v1480_v2, %v924_v25  ;;  %v3891_v31 = vpop.f32.mrb[9].mxu0  ;;  %v927_v32 = vpop.f32.mrb[10].mxu1 }
 0x1fe   : >> { %v1483_v33 = vpop.f32.mrb[10].mxu0  ;;  %v3780_v34 = vpop.f32.mrb[11].mxu1 }
 0x1ff   : >> { %v4197_v35 = vadd.f32 %v1483_v33, %v927_v32  ;;  %v3892_v36 = vpop.f32.mrb[11].mxu0 }
 0x20b   : >> { %v1611_v38 = vpop.f32.mrb[12].mxu1 }
 0x20c   : >> { %v1603_v40 = vpop.f32.mrb[0].mxu0  ;;  %v4192_v41 = vadd.f32 %v4191_v21, %v1611_v38  ;;  %v3915_v42 = vpop.f32.mrb[13].mxu1 }
 0x20d   : >> { %v4189_v43 = vadd.f32 %v1603_v40, %v908_v15  ;;  %v3911_v45 = vpop.f32.mrb[1].mxu0  ;;  %v1614_v49 = vpop.f32.mrb[14].mxu1 }
 0x20e   : >> { %v1641_v50 = vmul.f32 %v4192_v41, %v3330_v37  ;;  %v1606_v51 = vpop.f32.mrb[2].mxu0  ;;  %v4194_v52 = vadd.f32 %v4193_v47, %v1614_v49  ;;  %v3916_v53 = vpop.f32.mrb[15].mxu1  ;;  %v1681_v47 = vld [vmem:[#allocation6 + $0x28] sm:$0xff] }
 0x20f   : >> { %v1639_v54 = vmul.f32 %v4189_v43, %v3330_v37  ;;  %v4190_v55 = vadd.f32 %v1606_v51, %v911_v17  ;;  %v3912_v56 = vpop.f32.mrb[3].mxu0 }
 0x210   : >> { %v1654_v57 = vadd.f32 %v3331_v44, %v1641_v50  ;;  %v1642_v58 = vmul.f32 %v4194_v52, %v3330_v37 }
 0x211   : >> { %v1652_v59 = vadd.f32 %v3331_v44, %v1639_v54  ;;  %v1640_v60 = vmul.f32 %v4190_v55, %v3330_v37 }
 0x212   : >> { %vm1660_vm1 = vcmp.gt.f32.partialorder %v1654_v57, 0.0  ;;  %v1666_v61 = vmul.f32 0.01, %v1654_v57  ;;  %v1655_v63 = vadd.f32 %v3331_v44, %v1642_v58 }
 0x213   : >> { %vm1658_vm2 = vcmp.gt.f32.partialorder %v1652_v59, 0.0  ;;  %v1664_v26 = vmul.f32 0.01, %v1652_v59  ;;  %v1653_v28 = vadd.f32 %v3331_v44, %v1640_v60  ;;  %v1619_v0 = vpop.f32.mrb[16].mxu1 }
 0x214   : >> { %v1672_v1 = vsel %vm1660_vm1, %v1654_v57, %v1666_v61  ;;  %vm1661_vm3 = vcmp.gt.f32.partialorder %v1655_v63, 0.0  ;;  %v1667_v3 = vmul.f32 0.01, %v1655_v63  ;;  %v4196_v4 = vadd.f32 %v4195_v30, %v1619_v0  ;;  %v3919_v5 = vpop.f32.mrb[17].mxu1 }
 0x215   : >> { %v1670_v6 = vsel %vm1658_vm2, %v1652_v59, %v1664_v26  ;;  %v1684_v7 = vmul.f32 %v1678_v62, %v1672_v1  ;;  %vm1659_vm4 = vcmp.gt.f32.partialorder %v1653_v28, 0.0  ;;  %v1665_v8 = vmul.f32 0.01, %v1653_v28  ;;  %v1622_v10 = vpop.f32.mrb[18].mxu1 }
 0x216   : >> { %v1682_v12 = vmul.f32 %v1676_v27, %v1670_v6  ;;  %v1673_v13 = vsel %vm1661_vm3, %v1655_v63, %v1667_v3  ;;  %v1643_v14 = vmul.f32 %v4196_v4, %v3330_v37  ;;  %v4198_v15 = vadd.f32 %v4197_v35, %v1622_v10  ;;  %v3920_v16 = vpop.f32.mrb[19].mxu1 }
 0x217   : >> { %3334 = vst [vmem:[%s3090_s13 + $0x40] sm:$0xff] %v1684_v7  ;;  %v1671_v17 = vsel %vm1659_vm4, %v1653_v28, %v1665_v8  ;;  %v1685_v18 = vmul.f32 %v1679_v39, %v1673_v13 }
 0x218   : >> { %3332 = vst [vmem:[%s3090_s13 + $0x30] sm:$0xff] %v1682_v12  ;;  %v1683_v19 = vmul.f32 %v1677_v9, %v1671_v17  ;;  %v1656_v11 = vadd.f32 %v3331_v44, %v1643_v14  ;;  %v1644_v20 = vmul.f32 %v4198_v15, %v3330_v37 }
 0x219   : >> { %3335 = vst [vmem:[%s3090_s13 + $0x48] sm:$0xff] %v1685_v18 }
 0x21a   : >> { %3333 = vst [vmem:[%s3090_s13 + $0x38] sm:$0xff] %v1683_v19  ;;  %vm1662_vm5 = vcmp.gt.f32.partialorder %v1656_v11, 0.0  ;;  %v1668_v21 = vmul.f32 0.01, %v1656_v11  ;;  %v1657_v23 = vadd.f32 %v3331_v44, %v1644_v20 }
 0x21b   : > { %391 = sbr.rel (!%p389_p10) target bundleno = 151 (0x97), region = 167 }
 0x21c   : >> { %v1674_v24 = vsel %vm1662_vm5, %v1656_v11, %v1668_v21  ;;  %vm1663_vm6 = vcmp.gt.f32.partialorder %v1657_v23, 0.0  ;;  %v1669_v46 = vmul.f32 0.01, %v1657_v23 }
 0x21d   : >> { %v1686_v48 = vmul.f32 %v1680_v22, %v1674_v24 }
 0x21e   : >> { %v1675_v25 = vsel %vm1663_vm6, %v1657_v23, %v1669_v46 }
 0x21f   : >> { %3336 = vst [vmem:[%s3090_s13 + $0x50] sm:$0xff] %v1686_v48  ;;  %v1687_v2 = vmul.f32 %v1681_v47, %v1675_v25 }
 0x221   : >> { %3337 = vst [vmem:[%s3090_s13 + $0x58] sm:$0xff] %v1687_v2 }
 0x222   : > { %1698 = sbr.rel (%p3338_p3) target bundleno = 553 (0x229), region = 79  ;;  %v4849_v29 = vmov (!%p3338_p3), 0.0  }
 0x223   : > { %1699 = vst [vmem:[#allocation2 + $0x30] sm:$0xff] (!%p3338_p3), %v4849_v29  ;;  %1700 = vst [vmem:[#allocation2 + $0x38] sm:$0xff] (!%p3338_p3), %v4849_v29 }
 0x224   : > { %1701 = vst [vmem:[#allocation2 + $0x40] sm:$0xff] (!%p3338_p3), %v4849_v29 }
 0x229 PF: > { %p3339_p7 = scmp.ne.s32.totalorder %s5737_s18, 1 }
 0x22a   : > { %v4850_v30 = vmov (!%p3339_p7), 0.0  }
 0x22b   : > { %1705 = sbr.rel (%p3339_p7) target bundleno = 562 (0x232), region = 83  ;;  %1706 = vst [vmem:[#allocation2 + $0x108] sm:$0xff] (!%p3339_p7), %v4850_v30  ;;  %1707 = vst [vmem:[#allocation2 + $0x110] sm:$0xff] (!%p3339_p7), %v4850_v30 }
 0x22c   : > { %1708 = vst [vmem:[#allocation2 + $0x118] sm:$0xff] (!%p3339_p7), %v4850_v30 }
 0x232 PF: > { %s5375_s11 = smov 0  }
 0x233 LB: >> { %v4560_v31 = vld [vmem:[#allocation9 + $0x40] sm:$0xff]   ;;  %v4851_v32 = vmov 0.0   ;;  %v4562_v34 = vld [vmem:[#allocation9 + $0x48] sm:$0xff]   ;;  %vm4852_vm7 = vmmov 0   ;;  %v4564_v36 = vld [vmem:[#allocation9 + $0x50] sm:$0xff]   ;;  %s1715_s19 = smul.u32 48, %s4836_s11  ;;  %s4836_s11 = sphi %s5375_s11, %s1714_s11  }
 0x234   : >> { %3921 = vmatprep.subr.bf16.mxu1 %v4851_v32  ;;  %4033 = vmatprep.subr.bf16.mxu0 %v4851_v32  ;;  %v4561_v33 = vld [vmem:[#allocation9 + $0x100] sm:$0xff]   ;;  %v4563_v35 = vld [vmem:[#allocation9 + $0x108] sm:$0xff]   ;;  %v4565_v37 = vld [vmem:[#allocation9 + $0x110] sm:$0xff]   ;;  %s1714_s11 = sadd.s32 1, %s4836_s11  }
 0x235   : >> { %3922 = vmatpush3.bf16.msra.mxu1 %v4560_v31  ;;  %3937 = vmatprep.mubr.msk.bf16.mxu1 %vm4852_vm7, %v4851_v32  ;;  %v4566_v38 = vld [vmem:[#allocation9 + $0x58] sm:$0xff]   ;;  %v4568_v41 = vld [vmem:[#allocation9 + $0x60] sm:$0xff]   ;;  %v4570_v43 = vld [vmem:[#allocation9 + $0x68] sm:$0xff]   ;;  %s5401_s26 = scalar_lea.vmem [#allocation2], %s1715_s19  ;;  %s5630_s12 = scalar_lea.vmem %s5113_s20, %s1715_s19 [#allocation11] }
 0x236   : >> { %4034 = vmatpush3.bf16.msra.mxu0 %v4561_v33  ;;  %3923 = vmatprep.subr.bf16.mxu1 %v4851_v32  ;;  %v4567_v40 = vld [vmem:[#allocation9 + $0x118] sm:$0xff]   ;;  %v4569_v42 = vld [vmem:[#allocation9 + $0x120] sm:$0xff]   ;;  %v4571_v44 = vld [vmem:[#allocation9 + $0x128] sm:$0xff]   ;;  %p1711_p9 = scmp.ge.s32.totalorder %s1714_s11, 4  }
 0x237   : >> { %4035 = vmatprep.subr.bf16.mxu0 %v4851_v32  ;;  %4049 = vmatprep.mubr.msk.bf16.mxu0 %vm4852_vm7, %v4851_v32  ;;  %v4572_v45 = vld [vmem:[#allocation9 + $0x70] sm:$0xff]   ;;  %v4574_v50 = vld [vmem:[#allocation9 + $0x78] sm:$0xff]   ;;  %v3396_v54 = vld [vmem:[%s5401_s26 + $0x48] sm:$0xff]  ;;  %s4381_s10 = smul.u32 (%p1711_p9), 3072, %s4922_s9  ;;  %s3019_s14 = sshll.u32 (%p1711_p9), %s5113_s20, 4  ;;  %s5648_s14 = int_to_ptr.vmem [resolvable:$true] %s3019_s14 }
 0x238   : >> { %v4573_v49 = vld [vmem:[#allocation9 + $0x130] sm:$0xff]   ;;  %v4575_v51 = vld [vmem:[#allocation9 + $0x138] sm:$0xff]   ;;  %v4576_v57 = vld [vmem:[#allocation9] sm:$0xff]   ;;  %s3006_s13 = scalar_lea.sflag (%p1711_p9), [#allocation5], %s5089_s1  ;;  %s4746_s19 = scalar_lea.vmem (%p1711_p9), %s5648_s14, 3072 }
 0x239   : >> { %3924 = vmatpush3.bf16.msra.mxu1 %v4562_v34  ;;  %v3346_v52 = vld [vmem:[%s5401_s26 + $0x30] sm:$0xff]  ;;  %v3347_v53 = vld [vmem:[%s5401_s26 + $0x38] sm:$0xff]  ;;  %v4577_v59 = vld [vmem:[#allocation9 + $0x140] sm:$0xff]   ;;  %s5646_s21 = scalar_lea.hbm (%p1711_p9), %s5699_s8, %s4381_s10  ;;  %p4747_p12 = scmp.ne.s32.totalorder (%p1711_p9), %s5648_s14, %s4746_s19 }
 0x23a   : >> { %4036 = vmatpush3.bf16.msra.mxu0 %v4563_v35  ;;  %3925 = vmatprep.subr.bf16.mxu1 %v4851_v32  ;;  %v3397_v55 = vld [vmem:[%s5401_s26 + $0x50] sm:$0xff]  ;;  %v1751_v56 = vpack.c.bf16 %v3347_v53, %v3346_v52  ;;  %v5411_v60 = vld [vmem:[%s5401_s26 + $0x60] sm:$0xff]  ;;  %v5414_v61 = vld [vmem:[%s5401_s26 + $0x68] sm:$0xff]  ;;  %s4853_s11 = smov (%p1711_p9), [#allocation11]  }
 0x23b   : >> { %4037 = vmatprep.subr.bf16.mxu0 %v4851_v32  ;;  %v2267_v58 = vpack.c.bf16 %v3397_v55, %v3396_v54  ;;  %v2684_v62 = vpack.c.bf16 %v5414_v61, %v5411_v60  ;;  %v4578_v63 = vld [vmem:[#allocation9 + $0x8] sm:$0xff]   ;;  %v3348_v26 = vld [vmem:[%s5401_s26 + $0x40] sm:$0xff]  ;;  %v3398_v28 = vld [vmem:[%s5401_s26 + $0x58] sm:$0xff]  ;;  %p4748_p0 = pnand (%p1711_p9), %p4747_p12, %p5038_p11 }
 0x23c   : >> { %v4579_v27 = vld [vmem:[#allocation9 + $0x148] sm:$0xff]   ;;  %v1752_v0 = vpack.c.bf16 %v3396_v54, %v3348_v26  ;;  %v4580_v1 = vld [vmem:[#allocation9 + $0x10] sm:$0xff]   ;;  %v2268_v3 = vpack.c.bf16 %v5411_v60, %v3398_v28  ;;  %v4582_v4 = vld [vmem:[#allocation9 + $0x18] sm:$0xff]   ;;  %v1753_v7 = vpack.c.bf16 %v3398_v28, %v3397_v55 }
 0x23d   : >> { %3926 = vmatpush3.bf16.msra.mxu1 %v4564_v36  ;;  %v4581_v39 = vld [vmem:[#allocation9 + $0x150] sm:$0xff]   ;;  %v4583_v5 = vld [vmem:[#allocation9 + $0x158] sm:$0xff]   ;;  %v4584_v8 = vld [vmem:[#allocation9 + $0x20] sm:$0xff]   ;;  %p4749_p5 = pneg (%p1711_p9), %p4748_p0 }
 0x23e   : >> { %4038 = vmatpush3.bf16.msra.mxu0 %v4565_v37  ;;  %3927 = vmatprep.subr.bf16.mxu1 %v4851_v32  ;;  %v5432_v6 = vld [vmem:[%s5401_s26 + $0x70] sm:$0xff]  ;;  %v4585_v10 = vld [vmem:[#allocation9 + $0x160] sm:$0xff]   ;;  %v4586_v12 = vld [vmem:[#allocation9 + $0x28] sm:$0xff]  }
 0x23f   : >> { %4039 = vmatprep.subr.bf16.mxu0 %v4851_v32  ;;  %v2269_v9 = vpack.c.bf16 %v5432_v6, %v5414_v61  ;;  %v4587_v13 = vld [vmem:[#allocation9 + $0x168] sm:$0xff]   ;;  %v4588_v17 = vld [vmem:[#allocation9 + $0x30] sm:$0xff]   ;;  %v4590_v19 = vld [vmem:[#allocation9 + $0x38] sm:$0xff]  }
 0x240   : >> { %v5445_v14 = vld [vmem:[%s5401_s26 + $0x61] sm:$0xff]  ;;  %v5448_v15 = vld [vmem:[%s5401_s26 + $0x69] sm:$0xff]  ;;  %v4591_v20 = vld [vmem:[#allocation9 + $0x178] sm:$0xff]  }
 0x241   : >> { %3928 = vmatpush3.bf16.msra.mxu1 %v4566_v38  ;;  %v2823_v16 = vpack.c.bf16 %v5448_v15, %v5445_v14  ;;  %v4589_v18 = vld [vmem:[#allocation9 + $0x170] sm:$0xff]   ;;  %v4592_v46 = vld [vmem:[#allocation9 + $0x80] sm:$0xff]   ;;  %v4594_v25 = vld [vmem:[#allocation9 + $0x88] sm:$0xff]  }
 0x242   : >> { %4040 = vmatpush3.bf16.msra.mxu0 %v4567_v40  ;;  %3929 = vmatprep.subr.bf16.mxu1 %v4851_v32  ;;  %v3340_v11 = vld [vmem:[%s5401_s26 + $0x2f] sm:$0xff]  ;;  %v3341_v21 = vld [vmem:[%s5401_s26 + $0x37] sm:$0xff]  ;;  %v4593_v48 = vld [vmem:[#allocation9 + $0x180] sm:$0xff]  }
 0x243   : >> { %4041 = vmatprep.subr.bf16.mxu0 %v4851_v32  ;;  %v5462_v22 = vld [vmem:[%s5401_s26 + $0x49] sm:$0xff]  ;;  %v5466_v23 = vld [vmem:[%s5401_s26 + $0x51] sm:$0xff]  ;;  %v1724_v24 = vpack.c.bf16 %v3341_v21, %v3340_v11  ;;  %v3342_v29 = vld [vmem:[%s5401_s26 + $0x3f] sm:$0xff] }
 0x244   : >> { %v2406_v47 = vpack.c.bf16 %v5466_v23, %v5462_v22  ;;  %v4595_v2 = vld [vmem:[#allocation9 + $0x188] sm:$0xff]   ;;  %v5479_v31 = vld [vmem:[%s5401_s26 + $0x59] sm:$0xff]  ;;  %v4596_v34 = vld [vmem:[#allocation9 + $0x90] sm:$0xff]  }
 0x245   : >> { %3930 = vmatpush3.bf16.msra.mxu1 %v4568_v41  ;;  %v5475_v30 = vld [vmem:[%s5401_s26 + $0x47] sm:$0xff]  ;;  %v2407_v35 = vpack.c.bf16 %v5445_v14, %v5479_v31  ;;  %v4597_v36 = vld [vmem:[#allocation9 + $0x190] sm:$0xff]   ;;  %v4598_v37 = vld [vmem:[#allocation9 + $0x98] sm:$0xff]  }
 0x246   : >> { %4042 = vmatpush3.bf16.msra.mxu0 %v4569_v42  ;;  %3931 = vmatprep.subr.bf16.mxu1 %v4851_v32  ;;  %v1725_v33 = vpack.c.bf16 %v5475_v30, %v3342_v29  ;;  %v4599_v38 = vld [vmem:[#allocation9 + $0x198] sm:$0xff]   ;;  %v5492_v40 = vld [vmem:[%s5401_s26 + $0x4f] sm:$0xff]  ;;  %v4608_v26 = vld [vmem:[#allocation9 + $0xc0] sm:$0xff]  }
 0x247   : >> { %4043 = vmatprep.subr.bf16.mxu0 %v4851_v32  ;;  %v5495_v41 = vld [vmem:[%s5401_s26 + $0x57] sm:$0xff]  ;;  %v4609_v28 = vld [vmem:[#allocation9 + $0x1c0] sm:$0xff]   ;;  %v4618_v21 = vld [vmem:[#allocation9 + $0xe8] sm:$0xff]  }
 0x248   : >> { %v5499_v42 = vld [vmem:[%s5401_s26 + $0x71] sm:$0xff] }
 0x249   : >> { %3932 = vmatpush3.bf16.msra.mxu1 %v4570_v43  ;;  %v1726_v43 = vpack.c.bf16 %v5495_v41, %v5492_v40  ;;  %v4604_v52 = vld [vmem:[#allocation9 + $0xb0] sm:$0xff]   ;;  %v4606_v54 = vld [vmem:[#allocation9 + $0xb8] sm:$0xff]  }
 0x24a   : >> { %4044 = vmatpush3.bf16.msra.mxu0 %v4571_v44  ;;  %3933 = vmatprep.subr.bf16.mxu1 %v4851_v32  ;;  %v4600_v44 = vld [vmem:[#allocation9 + $0xa0] sm:$0xff]   ;;  %v4605_v53 = vld [vmem:[#allocation9 + $0x1b0] sm:$0xff]   ;;  %v3441_v29 = vld [vmem:[%s5401_s26 + $0x78] sm:$0xff] }
 0x24b   : >> { %4045 = vmatprep.subr.bf16.mxu0 %v4851_v32  ;;  %v3368_v55 = vld [vmem:[%s5401_s26 + $0x31] sm:$0xff]  ;;  %v2685_v61 = vpack.c.bf16 %v3441_v29, %v5432_v6 }
 0x24d   : >> { %3934 = vmatpush3.bf16.msra.mxu1 %v4572_v45  ;;  %v2408_v45 = vpack.c.bf16 %v5499_v42, %v5448_v15 }
 0x24e   : >> { %4046 = vmatpush3.bf16.msra.mxu0 %v4573_v49  ;;  %3935 = vmatprep.subr.bf16.mxu1 %v4851_v32  ;;  %v4601_v49 = vld [vmem:[#allocation9 + $0x1a0] sm:$0xff]  }
 0x24f   : >> { %4047 = vmatprep.subr.bf16.mxu0 %v4851_v32 }
 0x251   : >> { %3936 = vmatpush3.bf16.msra.mxu1 %v4574_v50  ;;  %v4602_v50 = vld [vmem:[#allocation9 + $0xa8] sm:$0xff]  }
 0x252   : >> { %4048 = vmatpush3.bf16.msra.mxu0 %v4575_v51  ;;  %3949 = vmatprep.subr.bf16.mxu1 %v4851_v32  ;;  %v4603_v51 = vld [vmem:[#allocation9 + $0x1a8] sm:$0xff]  }
 0x253   : >> { %4061 = vmatprep.subr.bf16.mxu0 %v4851_v32 }
 0x254   : >> { %3938 = vmatmul.mubr.bf16.vlgmr.msra.gmra.mrb[0].mxu1 %v1751_v56  ;;  %v3369_v56 = vld [vmem:[%s5401_s26 + $0x39] sm:$0xff] }
 0x255   : >> { %3950 = vmatpush3.bf16.msra.mxu1 %v4576_v57  ;;  %4050 = vmatmul.mubr.bf16.vlgmr.msra.gmra.mrb[0].mxu0 %v2267_v58  ;;  %v4607_v57 = vld [vmem:[#allocation9 + $0x1b8] sm:$0xff]  }
 0x256   : >> { %4062 = vmatpush3.bf16.msra.mxu0 %v4577_v59  ;;  %3951 = vmatprep.subr.bf16.mxu1 %v4851_v32  ;;  %v5524_v58 = vld [vmem:[%s5401_s26 + $0x5f] sm:$0xff]  ;;  %v5527_v59 = vld [vmem:[%s5401_s26 + $0x67] sm:$0xff] }
 0x257   : >> { %4063 = vmatprep.subr.bf16.mxu0 %v4851_v32  ;;  %3941 = vmatprep.mubr.msk.bf16.mxu1 %vm4852_vm7, %v4851_v32  ;;  %v2129_v60 = vpack.c.bf16 %v5524_v58, %v5495_v41 }
 0x258   : >> { %4053 = vmatprep.mubr.msk.bf16.mxu0 %vm4852_vm7, %v4851_v32 }
 0x259   : >> { %3952 = vmatpush3.bf16.msra.mxu1 %v4578_v63  ;;  %v1989_v63 = vpack.c.bf16 %v3369_v56, %v3368_v55 }
 0x25a   : >> { %4064 = vmatpush3.bf16.msra.mxu0 %v4579_v27  ;;  %3953 = vmatprep.subr.bf16.mxu1 %v4851_v32  ;;  %v2545_v27 = vpack.c.bf16 %v5527_v59, %v5524_v58 }
 0x25b   : >> { %4065 = vmatprep.subr.bf16.mxu0 %v4851_v32 }
 0x25c   : >> { %3942 = vmatmul.mubr.bf16.gmra.mrb[4].mxu1 %v1752_v0  ;;  %v4610_v0 = vld [vmem:[#allocation9 + $0xc8] sm:$0xff]  }
 0x25d   : >> { %3954 = vmatpush3.bf16.msra.mxu1 %v4580_v1  ;;  %4054 = vmatmul.mubr.bf16.gmra.mrb[4].mxu0 %v2268_v3  ;;  %v3370_v1 = vld [vmem:[%s5401_s26 + $0x41] sm:$0xff] }
 0x25e   : >> { %4066 = vmatpush3.bf16.msra.mxu0 %v4581_v39  ;;  %3955 = vmatprep.subr.bf16.mxu1 %v4851_v32  ;;  %v4611_v3 = vld [vmem:[#allocation9 + $0x1c8] sm:$0xff]  }
 0x25f   : >> { %4067 = vmatprep.subr.bf16.mxu0 %v4851_v32  ;;  %3945 = vmatprep.mubr.msk.bf16.mxu1 %vm4852_vm7, %v4851_v32  ;;  %v5537_v39 = vld [vmem:[%s5401_s26 + $0x6f] sm:$0xff] }
 0x260   : >> { %4057 = vmatprep.mubr.msk.bf16.mxu0 %vm4852_vm7, %v4851_v32  ;;  %v2130_v6 = vpack.c.bf16 %v5537_v39, %v5527_v59 }
 0x261   : >> { %3956 = vmatpush3.bf16.msra.mxu1 %v4582_v4  ;;  %v3427_v4 = vld [vmem:[%s5401_s26 + $0x77] sm:$0xff] }
 0x262   : >> { %4068 = vmatpush3.bf16.msra.mxu0 %v4583_v5  ;;  %3957 = vmatprep.subr.bf16.mxu1 %v4851_v32  ;;  %v1990_v5 = vpack.c.bf16 %v5462_v22, %v3370_v1  ;;  %v4619_v22 = vld [vmem:[#allocation9 + $0x1e8] sm:$0xff]  }
 0x263   : >> { %4069 = vmatprep.subr.bf16.mxu0 %v4851_v32 }
 0x264   : >> { %3946 = vmatmul.mubr.bf16.gmra.mrb[8].mxu1 %v1753_v7  ;;  %v4612_v7 = vld [vmem:[#allocation9 + $0xd0] sm:$0xff]  }
 0x265   : >> { %3958 = vmatpush3.bf16.msra.mxu1 %v4584_v8  ;;  %4058 = vmatmul.mubr.bf16.gmra.mrb[8].mxu0 %v2269_v9  ;;  %v2546_v8 = vpack.c.bf16 %v3427_v4, %v5537_v39  ;;  %v4613_v9 = vld [vmem:[#allocation9 + $0x1d0] sm:$0xff]   ;;  %v3466_v4 = vld [vmem:[%s5697_s6] ss:$0 sm:$0xff] }
 0x266   : >> { %4070 = vmatpush3.bf16.msra.mxu0 %v4585_v10  ;;  %3959 = vmatprep.subr.bf16.mxu1 %v4851_v32  ;;  %v4614_v10 = vld [vmem:[#allocation9 + $0xd8] sm:$0xff]  }
 0x267   : >> { %4071 = vmatprep.subr.bf16.mxu0 %v4851_v32  ;;  %3965 = vmatprep.mubr.msk.bf16.mxu1 %vm4852_vm7, %v4851_v32 }
 0x268   : >> { %4077 = vmatprep.mubr.msk.bf16.mxu0 %vm4852_vm7, %v4851_v32 }
 0x269   : >> { %3960 = vmatpush3.bf16.msra.mxu1 %v4586_v12  ;;  %v4615_v12 = vld [vmem:[#allocation9 + $0x1d8] sm:$0xff]  }
 0x26a   : >> { %4072 = vmatpush3.bf16.msra.mxu0 %v4587_v13  ;;  %3961 = vmatprep.subr.bf16.mxu1 %v4851_v32  ;;  %v3428_v13 = vld [vmem:[%s5401_s26 + $0x7f] sm:$0xff] }
 0x26b   : >> { %4073 = vmatprep.subr.bf16.mxu0 %v4851_v32 }
 0x26d   : >> { %3962 = vmatpush3.bf16.msra.mxu1 %v4588_v17  ;;  %v3429_v17 = vld [vmem:[%s5401_s26 + $0x87] sm:$0xff] }
 0x26e   : >> { %4074 = vmatpush3.bf16.msra.mxu0 %v4589_v18  ;;  %3963 = vmatprep.subr.bf16.mxu1 %v4851_v32  ;;  %v1991_v18 = vpack.c.bf16 %v5479_v31, %v5466_v23  ;;  %v2547_v11 = vpack.c.bf16 %v3429_v17, %v3428_v13  ;;  %v4620_v23 = vld [vmem:[#allocation9 + $0xf0] sm:$0xff]   ;;  %v3442_v31 = vld [vmem:[%s5401_s26 + $0x80] sm:$0xff] }
 0x26f   : >> { %4075 = vmatprep.subr.bf16.mxu0 %v4851_v32 }
 0x271   : >> { %3964 = vmatpush3.bf16.msra.mxu1 %v4590_v19  ;;  %v4616_v19 = vld [vmem:[#allocation9 + $0xe0] sm:$0xff]  }
 0x272   : >> { %4076 = vmatpush3.bf16.msra.mxu0 %v4591_v20  ;;  %3977 = vmatprep.subr.bf16.mxu1 %v4851_v32  ;;  %v4617_v20 = vld [vmem:[#allocation9 + $0x1e0] sm:$0xff]  }
 0x273   : >> { %4089 = vmatprep.subr.bf16.mxu0 %v4851_v32 }
 0x274   : >> { %3966 = vmatmul.mubr.bf16.vlgmr.msra.gmra.mrb[0].mxu1 %v1724_v24  ;;  %v4621_v24 = vld [vmem:[#allocation9 + $0x1f0] sm:$0xff]  }
 0x275   : >> { %3978 = vmatpush3.bf16.msra.mxu1 %v4592_v46  ;;  %4078 = vmatmul.mubr.bf16.vlgmr.msra.gmra.mrb[0].mxu0 %v2406_v47  ;;  %v4622_v46 = vld [vmem:[#allocation9 + $0xf8] sm:$0xff]  }
 0x276   : >> { %4090 = vmatpush3.bf16.msra.mxu0 %v4593_v48  ;;  %3979 = vmatprep.subr.bf16.mxu1 %v4851_v32  ;;  %v4623_v47 = vld [vmem:[#allocation9 + $0x1f8] sm:$0xff]   ;;  %v2128_v48 = vpack.c.bf16 %v5492_v40, %v5475_v30 }
 0x277   : >> { %4091 = vmatprep.subr.bf16.mxu0 %v4851_v32  ;;  %3969 = vmatprep.mubr.msk.bf16.mxu1 %vm4852_vm7, %v4851_v32  ;;  %v4627_v30 = vld [vmem:[#allocation9 + $0x218] sm:$0xff]  }
 0x278   : >> { %4081 = vmatprep.mubr.msk.bf16.mxu0 %vm4852_vm7, %v4851_v32  ;;  %v3455_v40 = vld [vmem:[%s5401_s26 + $0x79] sm:$0xff] }
 0x279   : >> { %3980 = vmatpush3.bf16.msra.mxu1 %v4594_v25  ;;  %v4624_v25 = vld [vmem:[#allocation9 + $0x200] sm:$0xff]   ;;  %v2824_v41 = vpack.c.bf16 %v3455_v40, %v5499_v42 }
 0x27a   : >> { %4092 = vmatpush3.bf16.msra.mxu0 %v4595_v2  ;;  %3981 = vmatprep.subr.bf16.mxu1 %v4851_v32  ;;  %v4625_v2 = vld [vmem:[#allocation9 + $0x208] sm:$0xff]  }
 0x27b   : >> { %4093 = vmatprep.subr.bf16.mxu0 %v4851_v32 }
 0x27c   : >> { %3970 = vmatmul.mubr.bf16.gmra.mrb[4].mxu1 %v1725_v33  ;;  %v3443_v33 = vld [vmem:[%s5401_s26 + $0x88] sm:$0xff] }
 0x27d   : >> { %3982 = vmatpush3.bf16.msra.mxu1 %v4596_v34  ;;  %4082 = vmatmul.mubr.bf16.gmra.mrb[4].mxu0 %v2407_v35  ;;  %v2686_v34 = vpack.c.bf16 %v3443_v33, %v3442_v31  ;;  %v4628_v35 = vld [vmem:[#allocation9 + $0x220] sm:$0xff]  }
 0x27e   : >> { %4094 = vmatpush3.bf16.msra.mxu0 %v4597_v36  ;;  %3983 = vmatprep.subr.bf16.mxu1 %v4851_v32  ;;  %v4629_v36 = vld [vmem:[#allocation9 + $0x228] sm:$0xff]  }
 0x27f   : >> { %4095 = vmatprep.subr.bf16.mxu0 %v4851_v32  ;;  %3973 = vmatprep.mubr.msk.bf16.mxu1 %vm4852_vm7, %v4851_v32 }
 0x280   : >> { %4085 = vmatprep.mubr.msk.bf16.mxu0 %vm4852_vm7, %v4851_v32 }
 0x281   : >> { %3984 = vmatpush3.bf16.msra.mxu1 %v4598_v37  ;;  %v4630_v37 = vld [vmem:[#allocation9 + $0x230] sm:$0xff]  }
 0x282   : >> { %4096 = vmatpush3.bf16.msra.mxu0 %v4599_v38  ;;  %3985 = vmatprep.subr.bf16.mxu1 %v4851_v32  ;;  %v4631_v38 = vld [vmem:[#allocation9 + $0x238] sm:$0xff]  }
 0x283   : >> { %4097 = vmatprep.subr.bf16.mxu0 %v4851_v32 }
 0x284   : >> { %3974 = vmatmul.mubr.bf16.gmra.mrb[8].mxu1 %v1726_v43  ;;  %v3456_v43 = vld [vmem:[%s5401_s26 + $0x81] sm:$0xff] }
 0x285   : >> { %3986 = vmatpush3.bf16.msra.mxu1 %v4600_v44  ;;  %4086 = vmatmul.mubr.bf16.gmra.mrb[8].mxu0 %v2408_v45  ;;  %v3457_v44 = vld [vmem:[%s5401_s26 + $0x89] sm:$0xff]  ;;  %s4750_s26 = sshll.u32 (%p1711_p9), %s4853_s11, 4  ;;  %s4751_s26 = int_to_ptr.vmem [resolvable:$false] %s4750_s26 }
 0x286   : >> { %4098 = vmatpush3.bf16.msra.mxu0 %v4601_v49  ;;  %3987 = vmatprep.subr.bf16.mxu1 %v4851_v32  ;;  %v2825_v45 = vpack.c.bf16 %v3457_v44, %v3456_v43  ;;  %s4752_s9 = scalar_lea.vmem (%p1711_p9), %s4751_s26, 6144  ;;  %p4753_p13 = scmp.lt.s32.totalorder (%p1711_p9), %s5648_s14, %s4751_s26 }
 0x287   : >> { %4099 = vmatprep.subr.bf16.mxu0 %v4851_v32  ;;  %3993 = vmatprep.mubr.msk.bf16.mxu1 %vm4852_vm7, %v4851_v32  ;;  %p4754_p1 = scmp.lt.s32.totalorder (%p1711_p9), %s4752_s9, %s4746_s19 }
 0x288   : >> { %4105 = vmatprep.mubr.msk.bf16.mxu0 %vm4852_vm7, %v4851_v32 }
 0x289   : >> { %3988 = vmatpush3.bf16.msra.mxu1 %v4602_v50  ;;  %p4755_p2 = por (%p1711_p9), %p4754_p1, %p4753_p13 }
 0x28a   : >> { %4100 = vmatpush3.bf16.msra.mxu0 %v4603_v51  ;;  %3989 = vmatprep.subr.bf16.mxu1 %v4851_v32 }
 0x28b   : >> { %4101 = vmatprep.subr.bf16.mxu0 %v4851_v32  ;;  %p4756_p4 = pnand (%p1711_p9), %p4755_p2, %p4749_p5 }
 0x28d   : >> { %3990 = vmatpush3.bf16.msra.mxu1 %v4604_v52 }
 0x28e   : >> { %4102 = vmatpush3.bf16.msra.mxu0 %v4605_v53  ;;  %3991 = vmatprep.subr.bf16.mxu1 %v4851_v32 }
 0x28f   : >> { %4103 = vmatprep.subr.bf16.mxu0 %v4851_v32 }
 0x291   : >> { %3992 = vmatpush3.bf16.msra.mxu1 %v4606_v54 }
 0x292   : >> { %4104 = vmatpush3.bf16.msra.mxu0 %v4607_v57  ;;  %4005 = vmatprep.subr.bf16.mxu1 %v4851_v32 }
 0x293   : >> { %4117 = vmatprep.subr.bf16.mxu0 %v4851_v32 }
 0x294   : >> { %3994 = vmatmul.mubr.bf16.vlgmr.msra.gmra.mrb[0].mxu1 %v1989_v63 }
 0x295   : >> { %4006 = vmatpush3.bf16.msra.mxu1 %v4608_v26  ;;  %4106 = vmatmul.mubr.bf16.vlgmr.msra.gmra.mrb[0].mxu0 %v2545_v27 }
 0x296   : >> { %4118 = vmatpush3.bf16.msra.mxu0 %v4609_v28  ;;  %4007 = vmatprep.subr.bf16.mxu1 %v4851_v32 }
 0x297   : >> { %4119 = vmatprep.subr.bf16.mxu0 %v4851_v32  ;;  %3997 = vmatprep.mubr.msk.bf16.mxu1 %vm4852_vm7, %v4851_v32 }
 0x298   : >> { %4109 = vmatprep.mubr.msk.bf16.mxu0 %vm4852_vm7, %v4851_v32 }
 0x299   : >> { %4008 = vmatpush3.bf16.msra.mxu1 %v4610_v0 }
 0x29a   : >> { %4120 = vmatpush3.bf16.msra.mxu0 %v4611_v3  ;;  %4009 = vmatprep.subr.bf16.mxu1 %v4851_v32 }
 0x29b   : >> { %4121 = vmatprep.subr.bf16.mxu0 %v4851_v32 }
 0x29c   : >> { %3998 = vmatmul.mubr.bf16.gmra.mrb[4].mxu1 %v1990_v5 }
 0x29d   : >> { %4010 = vmatpush3.bf16.msra.mxu1 %v4612_v7  ;;  %4110 = vmatmul.mubr.bf16.gmra.mrb[4].mxu0 %v2546_v8 }
 0x29e   : >> { %4122 = vmatpush3.bf16.msra.mxu0 %v4613_v9  ;;  %4011 = vmatprep.subr.bf16.mxu1 %v4851_v32 }
 0x29f   : >> { %4123 = vmatprep.subr.bf16.mxu0 %v4851_v32  ;;  %4001 = vmatprep.mubr.msk.bf16.mxu1 %vm4852_vm7, %v4851_v32 }
 0x2a0   : >> { %4113 = vmatprep.mubr.msk.bf16.mxu0 %vm4852_vm7, %v4851_v32 }
 0x2a1   : >> { %4012 = vmatpush3.bf16.msra.mxu1 %v4614_v10 }
 0x2a2   : >> { %4124 = vmatpush3.bf16.msra.mxu0 %v4615_v12  ;;  %4013 = vmatprep.subr.bf16.mxu1 %v4851_v32  ;;  %v3467_v12 = vld [vmem:[%s5698_s7] ss:$0 sm:$0xff] }
 0x2a3   : >> { %4125 = vmatprep.subr.bf16.mxu0 %v4851_v32 }
 0x2a4   : >> { %4002 = vmatmul.mubr.bf16.gmra.mrb[8].mxu1 %v1991_v18 }
 0x2a5   : >> { %4014 = vmatpush3.bf16.msra.mxu1 %v4616_v19  ;;  %4114 = vmatmul.mubr.bf16.gmra.mrb[8].mxu0 %v2547_v11 }
 0x2a6   : >> { %4126 = vmatpush3.bf16.msra.mxu0 %v4617_v20  ;;  %4015 = vmatprep.subr.bf16.mxu1 %v4851_v32 }
 0x2a7   : >> { %4127 = vmatprep.subr.bf16.mxu0 %v4851_v32  ;;  %4021 = vmatprep.mubr.msk.bf16.mxu1 %vm4852_vm7, %v4851_v32 }
 0x2a8   : >> { %4133 = vmatprep.mubr.msk.bf16.mxu0 %vm4852_vm7, %v4851_v32 }
 0x2a9   : >> { %4016 = vmatpush3.bf16.msra.mxu1 %v4618_v21 }
 0x2aa   : >> { %4128 = vmatpush3.bf16.msra.mxu0 %v4619_v22  ;;  %4017 = vmatprep.subr.bf16.mxu1 %v4851_v32 }
 0x2ab   : >> { %4129 = vmatprep.subr.bf16.mxu0 %v4851_v32 }
 0x2ad   : >> { %4018 = vmatpush3.bf16.msra.mxu1 %v4620_v23 }
 0x2ae   : >> { %4130 = vmatpush3.bf16.msra.mxu0 %v4621_v24  ;;  %4019 = vmatprep.subr.bf16.mxu1 %v4851_v32 }
 0x2af   : >> { %4131 = vmatprep.subr.bf16.mxu0 %v4851_v32 }
 0x2b1   : >> { %4020 = vmatpush3.bf16.msra.mxu1 %v4622_v46 }
 0x2b2   : >> { %4132 = vmatpush3.bf16.msra.mxu0 %v4623_v47  ;;  %4275 = vmatprep.subr.bf16.mxu1 %v4851_v32 }
 0x2b3   : >> { %4145 = vmatprep.subr.bf16.mxu0 %v4851_v32 }
 0x2b4   : >> { %4022 = vmatmul.mubr.bf16.vlgmr.msra.gmra.mrb[0].mxu1 %v2128_v48 }
 0x2b5   : >> { %4134 = vmatmul.mubr.bf16.vlgmr.msra.gmra.mrb[0].mxu0 %v2684_v62  ;;  %4283 = vmatpush3.bf16.msra.mxu1 %v4624_v25  ;;  %v4626_v62 = vld [vmem:[#allocation9 + $0x210] sm:$0xff]  }
 0x2b6   : >> { %4146 = vmatpush3.bf16.msra.mxu0 %v4624_v25  ;;  %4276 = vmatprep.subr.bf16.mxu1 %v4851_v32 }
 0x2b7   : >> { %4147 = vmatprep.subr.bf16.mxu0 %v4851_v32  ;;  %4025 = vmatprep.mubr.msk.bf16.mxu1 %vm4852_vm7, %v4851_v32 }
 0x2b8   : >> { %4137 = vmatprep.mubr.msk.bf16.mxu0 %vm4852_vm7, %v4851_v32 }
 0x2b9   : >> { %4284 = vmatpush3.bf16.msra.mxu1 %v4625_v2 }
 0x2ba   : >> { %4148 = vmatpush3.bf16.msra.mxu0 %v4625_v2  ;;  %4277 = vmatprep.subr.bf16.mxu1 %v4851_v32 }
 0x2bb   : >> { %4149 = vmatprep.subr.bf16.mxu0 %v4851_v32 }
 0x2bc   : >> { %4026 = vmatmul.mubr.bf16.gmra.mrb[4].mxu1 %v2129_v60 }
 0x2bd   : >> { %4138 = vmatmul.mubr.bf16.gmra.mrb[4].mxu0 %v2685_v61  ;;  %4285 = vmatpush3.bf16.msra.mxu1 %v4626_v62 }
 0x2be   : >> { %4150 = vmatpush3.bf16.msra.mxu0 %v4626_v62  ;;  %4278 = vmatprep.subr.bf16.mxu1 %v4851_v32 }
 0x2bf   : >> { %4151 = vmatprep.subr.bf16.mxu0 %v4851_v32  ;;  %4029 = vmatprep.mubr.msk.bf16.mxu1 %vm4852_vm7, %v4851_v32 }
 0x2c0   : >> { %4141 = vmatprep.mubr.msk.bf16.mxu0 %vm4852_vm7, %v4851_v32 }
 0x2c1   : >> { %4286 = vmatpush3.bf16.msra.mxu1 %v4627_v30 }
 0x2c2   : >> { %4152 = vmatpush3.bf16.msra.mxu0 %v4627_v30  ;;  %4279 = vmatprep.subr.bf16.mxu1 %v4851_v32 }
 0x2c3   : >> { %4153 = vmatprep.subr.bf16.mxu0 %v4851_v32 }
 0x2c4   : >> { %4030 = vmatmul.mubr.bf16.gmra.mrb[8].mxu1 %v2130_v6 }
 0x2c5   : >> { %4142 = vmatmul.mubr.bf16.gmra.mrb[8].mxu0 %v2686_v34  ;;  %4287 = vmatpush3.bf16.msra.mxu1 %v4628_v35 }
 0x2c6   : >> { %4154 = vmatpush3.bf16.msra.mxu0 %v4628_v35  ;;  %4280 = vmatprep.subr.bf16.mxu1 %v4851_v32 }
 0x2c7   : >> { %4155 = vmatprep.subr.bf16.mxu0 %v4851_v32  ;;  %4161 = vmatprep.mubr.msk.bf16.mxu0 %vm4852_vm7, %v4851_v32 }
 0x2c8   : >> { %4165 = vmatprep.mubr.msk.bf16.mxu1 %vm4852_vm7, %v4851_v32 }
 0x2c9   : >> { %4288 = vmatpush3.bf16.msra.mxu1 %v4629_v36 }
 0x2ca   : >> { %4156 = vmatpush3.bf16.msra.mxu0 %v4629_v36  ;;  %4281 = vmatprep.subr.bf16.mxu1 %v4851_v32 }
 0x2cb   : >> { %4157 = vmatprep.subr.bf16.mxu0 %v4851_v32 }
 0x2cd   : >> { %4289 = vmatpush3.bf16.msra.mxu1 %v4630_v37 }
 0x2ce   : >> { %4158 = vmatpush3.bf16.msra.mxu0 %v4630_v37  ;;  %4282 = vmatprep.subr.bf16.mxu1 %v4851_v32 }
 0x2cf   : >> { %4159 = vmatprep.subr.bf16.mxu0 %v4851_v32 }
 0x2d1   : >> { %4290 = vmatpush3.bf16.msra.mxu1 %v4631_v38 }
 0x2d2   : >> { %4160 = vmatpush3.bf16.msra.mxu0 %v4631_v38 }
 0x2d4   : >> { %4166 = vmatmul.mubr.bf16.vlgmr.msra.gmra.mrb[12].mxu1 %v2824_v41 }
 0x2d5   : >> { %4162 = vmatmul.mubr.bf16.vlgmr.msra.gmra.mrb[0].mxu0 %v2823_v16  ;;  %4169 = vmatprep.mubr.msk.bf16.mxu1 %vm4852_vm7, %v4851_v32 }
 0x2dc   : >> { %4170 = vmatmul.mubr.bf16.gmra.mrb[16].mxu1 %v2825_v45 }
 0x387   : >> { %v2230_v49 = vpop.f32.mrb[0].mxu1 }
 0x388   : >> { %v4023_v50 = vpop.f32.mrb[1].mxu1 }
 0x389   : >> { %v2233_v51 = vpop.f32.mrb[2].mxu1 }
 0x38a   : >> { %v4024_v52 = vpop.f32.mrb[3].mxu1 }
 0x38f   : >> { %v2238_v53 = vpop.f32.mrb[4].mxu1 }
 0x390   : >> { %v2794_v42 = vpop.f32.mrb[4].mxu0  ;;  %v4027_v54 = vpop.f32.mrb[5].mxu1 }
 0x391   : >> { %v4293_v55 = vadd.f32 %v2794_v42, %v2238_v53  ;;  %v4139_v56 = vpop.f32.mrb[5].mxu0  ;;  %v2241_v57 = vpop.f32.mrb[6].mxu1 }
 0x392   : >> { %v2797_v58 = vpop.f32.mrb[6].mxu0  ;;  %v4028_v14 = vpop.f32.mrb[7].mxu1 }
 0x393   : >> { %v4295_v15 = vadd.f32 %v2797_v58, %v2241_v57  ;;  %v4140_v16 = vpop.f32.mrb[7].mxu0 }
 0x397   : >> { %v2246_v59 = vpop.f32.mrb[8].mxu1 }
 0x398   : >> { %v2802_v32 = vpop.f32.mrb[8].mxu0  ;;  %v4031_v63 = vpop.f32.mrb[9].mxu1 }
 0x399   : >> { %v4297_v26 = vadd.f32 %v2802_v32, %v2246_v59  ;;  %v4143_v27 = vpop.f32.mrb[9].mxu0  ;;  %v2249_v28 = vpop.f32.mrb[10].mxu1 }
 0x39a   : >> { %v2805_v0 = vpop.f32.mrb[10].mxu0  ;;  %v4032_v1 = vpop.f32.mrb[11].mxu1 }
 0x39b   : >> { %v4299_v3 = vadd.f32 %v2805_v0, %v2249_v28  ;;  %v4144_v39 = vpop.f32.mrb[11].mxu0 }
 0x3a7   : >> { %v2933_v5 = vpop.f32.mrb[12].mxu1 }
 0x3a8   : >> { %v2925_v7 = vpop.f32.mrb[0].mxu0  ;;  %v4294_v8 = vadd.f32 %v4293_v55, %v2933_v5  ;;  %v4167_v9 = vpop.f32.mrb[13].mxu1 }
 0x3a9   : >> { %v4291_v10 = vadd.f32 %v2925_v7, %v2230_v49  ;;  %v4163_v13 = vpop.f32.mrb[1].mxu0  ;;  %v2936_v17 = vpop.f32.mrb[14].mxu1 }
 0x3aa   : >> { %v2963_v18 = vmul.f32 %v4294_v8, %v3466_v4  ;;  %v2928_v19 = vpop.f32.mrb[2].mxu0  ;;  %v4296_v11 = vadd.f32 %v4295_v15, %v2936_v17  ;;  %v4168_v20 = vpop.f32.mrb[15].mxu1 }
 0x3ab   : >> { %v2961_v21 = vmul.f32 %v4291_v10, %v3466_v4  ;;  %v4292_v22 = vadd.f32 %v2928_v19, %v2233_v51  ;;  %v4164_v23 = vpop.f32.mrb[3].mxu0 }
 0x3ac   : >> { %v2976_v24 = vadd.f32 %v3467_v12, %v2963_v18  ;;  %v2964_v46 = vmul.f32 %v4296_v11, %v3466_v4 }
 0x3ad   : >> { %v2974_v47 = vadd.f32 %v3467_v12, %v2961_v21  ;;  %v2962_v48 = vmul.f32 %v4292_v22, %v3466_v4 }
 0x3ae   : >> { %vm2982_vm8 = vcmp.gt.f32.partialorder %v2976_v24, 0.0  ;;  %v2988_v25 = vmul.f32 0.01, %v2976_v24  ;;  %v2977_v2 = vadd.f32 %v3467_v12, %v2964_v46 }
 0x3af   : >> { %vm2980_vm9 = vcmp.gt.f32.partialorder %v2974_v47, 0.0  ;;  %v2986_v29 = vmul.f32 0.01, %v2974_v47  ;;  %v2975_v60 = vadd.f32 %v3467_v12, %v2962_v48  ;;  %v2941_v61 = vpop.f32.mrb[16].mxu1 }
 0x3b0   : >> { %v2994_v62 = vsel %vm2982_vm8, %v2976_v24, %v2988_v25  ;;  %vm2983_vm10 = vcmp.gt.f32.partialorder %v2977_v2, 0.0  ;;  %v2989_v30 = vmul.f32 0.01, %v2977_v2  ;;  %v4298_v31 = vadd.f32 %v4297_v26, %v2941_v61  ;;  %v4171_v33 = vpop.f32.mrb[17].mxu1 }
 0x3b1   : >> { %v2992_v6 = vsel %vm2980_vm9, %v2974_v47, %v2986_v29  ;;  %3001 = vst [vmem:[%s5630_s12 + $0x10] sm:$0xff] %v2994_v62  ;;  %vm2981_vm11 = vcmp.gt.f32.partialorder %v2975_v60, 0.0  ;;  %v2987_v34 = vmul.f32 0.01, %v2975_v60  ;;  %v2944_v35 = vpop.f32.mrb[18].mxu1 }
 0x3b2   : >> { %2999 = vst [vmem:[%s5630_s12] sm:$0xff] %v2992_v6  ;;  %v2995_v36 = vsel %vm2983_vm10, %v2977_v2, %v2989_v30  ;;  %v2965_v37 = vmul.f32 %v4298_v31, %v3466_v4  ;;  %v4300_v38 = vadd.f32 %v4299_v3, %v2944_v35  ;;  %v4172_v40 = vpop.f32.mrb[19].mxu1 }
 0x3b3   : >> { %v2993_v41 = vsel %vm2981_vm11, %v2975_v60, %v2987_v34  ;;  %3002 = vst [vmem:[%s5630_s12 + $0x18] sm:$0xff] %v2995_v36 }
 0x3b4   : >> { %3000 = vst [vmem:[%s5630_s12 + $0x8] sm:$0xff] %v2993_v41  ;;  %v2978_v43 = vadd.f32 %v3467_v12, %v2965_v37  ;;  %v2966_v44 = vmul.f32 %v4300_v38, %v3466_v4 }
 0x3b5   : > { %1713 = sbr.rel (!%p1711_p9) target bundleno = 563 (0x233), region = 178 }
 0x3b6   : >> { %vm2984_vm12 = vcmp.gt.f32.partialorder %v2978_v43, 0.0  ;;  %v2990_v45 = vmul.f32 0.01, %v2978_v43  ;;  %v2979_v49 = vadd.f32 %v3467_v12, %v2966_v44 }
 0x3b8   : >> { %v2996_v50 = vsel %vm2984_vm12, %v2978_v43, %v2990_v45  ;;  %vm2985_vm13 = vcmp.gt.f32.partialorder %v2979_v49, 0.0  ;;  %v2991_v51 = vmul.f32 0.01, %v2979_v49 }
 0x3b9   : >> { %3003 = vst [vmem:[%s5630_s12 + $0x20] sm:$0xff] %v2996_v50 }
 0x3ba   : >> { %v2997_v52 = vsel %vm2985_vm13, %v2979_v49, %v2991_v51 }
 0x3bb   : >> { %3004 = vst [vmem:[%s5630_s12 + $0x28] sm:$0xff] %v2997_v52 }
 0x3bc   : > { %4759 = shalt.err (!%p4756_p4)
}
 0x3bd   : > { %s4760_s20 = scalar_lea.hbm %s5646_s21, 3072  ;;  %s4764_s18 = scalar_lea.hbm %s5699_s8, 12288 }
 0x3be   : > { %p4761_p6 = scmp.ne.s32.totalorder %s5646_s21, %s4760_s20  ;;  %p4765_p3 = scmp.lt.u32.totalorder %s5646_s21, %s5699_s8 }
 0x3bf   : > { %p4766_p7 = scmp.lt.u32.totalorder %s4764_s18, %s4760_s20  ;;  %p4768_p12 = scmp.lt.u32.totalorder %s4760_s20, %s5646_s21 }
 0x3c0   : > { %p4762_p8 = pnand %p4761_p6, %p5038_p11 }
 0x3c1   : > { %p4767_p9 = por %p4766_p7, %p4765_p3 }
 0x3c2   : > { %p4763_p10 = pneg %p4762_p8 }
 0x3c3   : > { %p4769_p0 = por %p4768_p12, %p4767_p9 }
 0x3c5   : > { %p4770_p5 = pnand %p4769_p0, %p4763_p10 }
 0x3c7   : > { %4773 = shalt.err (!%p4770_p5)
}
 0x3c8   : > { %s4854_s10 = smov 128   ;;  %s4855_s17 = smov 8  }
 0x3c9   : > { %4396 = dma.vmem_to_hbm [thread:$0]  (%p5038_p11), %s5648_s14, 3072, %s5646_s21, %s3006_s13, %s4854_s10, %s4854_s10, %s4855_s17  }
 0x3ca PF: > { %s5727_s27 = sld [smem:[#allocation16_spill]]  ;;  %s5728_s19 = sld [smem:[#allocation17_spill]] }
 0x3cb   : > { %p4423_p13 = scmp.ge.s32.totalorder %s4828_s30, 2 }
 0x3d0   : > { %s3034_s11 = sand.u32 1, %s5727_s27   ;;  %p5729_p1 = scmp.ne.s32.totalorder %s5728_s19, 0 }
 0x3d1   : > { %s3035_s26 = scalar_lea.sflag [#allocation5], %s3034_s11 }
 0x3d2   : > { %p4413_p2 = pnand %p4423_p13, %p5729_p1 }
 0x3d4   : > { %4811 = dma.done.wait (!%p4413_p2), %s3035_s26, 3072  }
 0x3d5   : > { %4813 = vsyncadd (!%p4413_p2), %s3035_s26, 4294964224  ;;  %p23_p4 = scmp.ge.s32.totalorder %s5006_s25, 6   ;;  %s5730_s27 = smov %s4820_s28 }
 0x3d6   : > { %s5731_s28 = smov %s4824_s29  ;;  %s5732_s29 = smov %s5034_s16 }
 0x3d7   : > { %s5733_s30 = smov %s5006_s25  ;;  %25 = sbr.rel (!%p23_p4) target bundleno = 9 (0x9), region = 189 }
 0x3de   :  { %3040 = vsyncpa [#allocation4], 1 }
 0x3df   :  { %3042 = vsyncpa [#allocation4 + $0x1], 1 }
 0x3e0   :  { %3043 = vsyncpa [#allocation7], 1 }
 0x3e1   :  { %3044 = vsyncpa [#allocation10], 1 }
 0x3e2   :  { %3045 = vsyncpa [#allocation5], 1 }
 0x3e3   :  { %3047 = vsyncpa [#allocation5 + $0x1], 1 }

</bundles_post_ra>
